<compile_context>
chip_gen: v6e
topology: v6e:2x2x1
jax: 0.10.0
libtpu: 0.0.40
codegen_flags: <defaults>
</compile_context>

<pallas_src>
import math
import jax
import jax.numpy as jnp
from jax import lax
from jax.experimental import pallas as pl
from jax.experimental.pallas import tpu as pltpu

# ----- static config (mirrors SlotAttention.__init__) -----
TRUTH_INPUT_SIZE = 16      # truth_input_size
TRUTH_SKIP_SIZE = 8        # config['embedding_model']['truth_inputsize']
FASTSIM_INPUT_SIZE = 16    # fastsim_input_size
KQV_LAYERS = (32, 32)      # config['output_model']['KQV_layers']
ATTN_DIM = 30              # key/query output size (hard-coded 30 in the module)
MLP_HIDDEN = 64
LN_EPS = 1e-5
NORM = 1.0 / math.sqrt(30.0)     # self.norm = 1/sqrt(30)

H = FASTSIM_INPUT_SIZE
PACK_W = 64                # packed lane width of the weight buffers
LANE = 128                 # Nt is padded to a multiple of the TPU lane count

# --- row spans in the truth-precompute weight pack (bf16, (256, 64)); all multiples of 16 ---
T_W1 = (0, 32)      # [kW1 | vW1] for concat(truth_feat, truth_feat0) zero-padded to 32 cols
T_W2 = (32, 96)     # block-diag(kW2, vW2)
T_WK3 = (96, 160)   # key head: rows 0:32 = kW3 (cols 0:30), rows 32:64 = 0
T_WP = (160, 224)   # pre_i head: rows 32:64 = vW3 @ wi_values (cols 0:48), rows 0:32 = 0
T_WPX = (224, 256)  # pre_i skip: rows 16:24 = wi_features0, rest 0
BT_1, BT_2, BT_K3, BT_P = range(4)          # bias rows in the (4, 64) f32 truth bias pack

# --- row spans in the per-tile (fastsim) weight pack (bf16, (256, 64)) ---
M_Q1 = (0, 32)      # qW1 (32 -> 32, padded to 64 cols)
M_Q2 = (32, 96)     # qW2 (padded to 64x64)
M_Q3 = (96, 160)    # qW3 * 1/sqrt(30) (padded to 64x64, real cols 0:30)
M_WH = (160, 176)   # [whr | whz | whn]  (16, 48 in 64)
M_M1 = (176, 192)   # residual-MLP W1 (16, 64)
M_M2 = (192, 256)   # residual-MLP W2 (64, 16 in 64)
B_Q1, B_Q2, B_Q3, B_GI, B_GH, B_LNW, B_LNB, B_M1, B_M2 = range(9)   # (9, 64) f32 bias pack


# ====================== kernels ======================

def truth_precompute_kernel(tx_ref, w_ref, b_ref, key_ref, prei_ref):
    """One-shot truth-side precompute: fused key/values MLP + GRU input pre-activation."""
    bf16 = jnp.bfloat16

    def dot(a, b):
        return jnp.dot(a, b, preferred_element_type=jnp.float32)

    def w(span):
        return w_ref[span[0]:span[1], :]

    def b(row):
        return b_ref[row:row + 1, :]

    tx = tx_ref[...].astype(bf16)                                   # (Nt_pad, 32)
    # fused key/values MLP: block-diagonal hidden layers sharing the truth input
    h = jnp.maximum(dot(tx, w(T_W1)) + b(BT_1), 0.0)                # (Nt_pad, 64)
    h = jnp.maximum(dot(h.astype(bf16), w(T_W2)) + b(BT_2), 0.0)
    hb = h.astype(bf16)
    # key head: cols 0:30 real, cols 30:64 exactly zero (zero weight/bias padding)
    key_ref[...] = dot(hb, w(T_WK3)) + b(BT_K3)
    # pre_i = [values | truth_features_0] @ [Wir|Wiz|Win], folded so it comes straight off
    # the fused hidden state: values @ Wi == h @ (vW3 @ Wi) + vb3 @ Wi  (vb3 term in b(BT_P))
    prei_ref[...] = dot(hb, w(T_WP)) + dot(tx, w(T_WPX)) + b(BT_P)


def slot_attention_kernel(fsq_ref, fs_ref, key_t_ref, prei_ref, mask_ref, w_ref, b_ref,
                          out_feat, out_attn):
    """Per fastsim tile: query MLP, masked softmax attention, GRUCell, LayerNorm, MLP."""
    f32, bf16 = jnp.float32, jnp.bfloat16

    def dot(a, b):
        return jnp.dot(a, b, preferred_element_type=f32)

    def w(span):
        return w_ref[span[0]:span[1], :]

    def b(row):
        return b_ref[row:row + 1, :]

    fsq = fsq_ref[...]                 # (T, 32) = [fastsim features | global features]
    fs = fs_ref[...]                   # (T, 16) fastsim features (GRU hidden + residual)

    # ---- query MLP (1/sqrt(30) folded into the last layer) ----
    q = jnp.maximum(dot(fsq.astype(bf16), w(M_Q1)) + b(B_Q1), 0.0)
    q = jnp.maximum(dot(q.astype(bf16), w(M_Q2)) + b(B_Q2), 0.0)
    q = dot(q.astype(bf16), w(M_Q3)) + b(B_Q3)                      # (T, 64)

    # ---- attention logits + masked softmax over incoming truth edges ----
    # key_t is pre-transposed (64, Nt_pad); rows 30:64 are exactly zero, so neither the
    # query padding lanes nor the values can leak into the logits. Padded truth columns
    # are pushed to -1e30 by mask_ref so they softmax to exactly 0.
    logits = dot(q.astype(bf16), key_t_ref[...]) + mask_ref[...]    # (T, Nt_pad)
    m = jnp.max(logits, axis=1, keepdims=True)
    e = jnp.exp(logits - m)
    attn = e * pl.reciprocal(jnp.sum(e, axis=1, keepdims=True), approx=True)
    out_attn[...] = attn               # lane-dense (Nt_pad % 128 == 0) unmasked store

    # ---- GRUCell(weighted_sum, fastsim features): gi = attn @ pre_i (pre_i precomputed) ----
    gi = dot(attn.astype(bf16), prei_ref[...]) + b(B_GI)            # (T, 64): gates in 0:48
    gh = dot(fs.astype(bf16), w(M_WH)) + b(B_GH)
    # NOTE: the 16-lane gate slices below cost a small lane relayout; only worth replacing
    # with a full-width sigmoid + pltpu.roll if the XLU ever becomes the binding slot.
    r = jax.nn.sigmoid(gi[:, 0:H] + gh[:, 0:H])
    z = jax.nn.sigmoid(gi[:, H:2 * H] + gh[:, H:2 * H])
    n = jnp.tanh(gi[:, 2 * H:3 * H] + r * gh[:, 2 * H:3 * H])
    h_new = (1.0 - z) * n + z * fs

    # ---- LayerNorm(fastsim_input_size) ----
    mu = jnp.mean(h_new, axis=1, keepdims=True)
    var = jnp.mean((h_new - mu) * (h_new - mu), axis=1, keepdims=True)
    ln = ((h_new - mu) * lax.rsqrt(var + LN_EPS)
          * b_ref[B_LNW:B_LNW + 1, 0:H] + b_ref[B_LNB:B_LNB + 1, 0:H])

    # ---- residual MLP: Linear(16,64)-ReLU-Linear(64,16) ----
    mh = jnp.maximum(dot(ln.astype(bf16), w(M_M1)) + b(B_M1), 0.0)
    mo = dot(mh.astype(bf16), w(M_M2)) + b(B_M2)

    out_feat[...] = fs + mo[:, 0:H]


# ====================== wrappers ======================

def _round_up(x, m):
    return -(-x // m) * m


def _whole(shape):
    return pl.BlockSpec(shape, lambda i: (0,) * len(shape))


def _plan_tiles(nf, nt_pad, nt_vmem_budget):
    """Pick the fastsim tile so (a) the Nt-scaled live set fits the VMEM budget and
    (b) the grid has >= 2 steps whenever Nf allows it (v7x dual TC + pipelining overlap)."""
    # ~6 live (tile, Nt_pad) f32-equivalent buffers: logits, exp, attn, attn(bf16), and the
    # double-buffered out_attn block.
    cap = max(8, nt_vmem_budget // (6 * 4 * nt_pad))
    tile = 8
    while tile * 2 <= min(512, cap):
        tile *= 2
    while tile > 8 and pl.cdiv(nf, tile) < 2:
        tile //= 2
    nf_pad = _round_up(max(nf, tile), tile)
    return tile, nf_pad


def _truth_precompute(tx_pad, w_truth, b_truth, vmem_limit_bytes):
    nt_pad = tx_pad.shape[0]
    return pl.pallas_call(
        truth_precompute_kernel,
        grid=(1,),
        in_specs=[_whole(tx_pad.shape), _whole(w_truth.shape), _whole(b_truth.shape)],
        out_specs=(_whole((nt_pad, PACK_W)), _whole((nt_pad, PACK_W))),
        out_shape=(jax.ShapeDtypeStruct((nt_pad, PACK_W), jnp.float32),
                   jax.ShapeDtypeStruct((nt_pad, PACK_W), jnp.float32)),
        compiler_params=pltpu.CompilerParams(vmem_limit_bytes=vmem_limit_bytes),
    )(tx_pad, w_truth, b_truth)


def slot_attention_forward(truth_feat, truth_feat0, fs_feat, fs_glob, packed,
                           *, vmem_limit_bytes=40 * 1024 * 1024,
                           nt_vmem_budget=24 * 1024 * 1024):
    """Full forward. Defaults are sized for v7x (64 MiB VMEM); on v5e/v6e (128 MiB physical)
    both budgets can be raised (e.g. ~100 MiB / ~64 MiB) to unlock 512-1024 row tiles for
    very large Nt."""
    w_truth, b_truth, w_main, b_main = packed
    nt = truth_feat.shape[0]
    nf = fs_feat.shape[0]
    nt_pad = _round_up(max(nt, LANE), LANE)
    tile, nf_pad = _plan_tiles(nf, nt_pad, nt_vmem_budget)

    # one-time host/XLA prep: concats (fuse the split layer-1 matmuls), zero row padding
    # (avoids computing on undefined rows in partial tiles), and the padded-column mask.
    tx = jnp.concatenate([truth_feat, truth_feat0], axis=1)                  # (Nt, 24)
    tx = jnp.pad(tx, ((0, nt_pad - nt), (0, 2 * H - tx.shape[1])))           # (Nt_pad, 32)
    fsq = jnp.pad(jnp.concatenate([fs_feat, fs_glob], axis=1),
                  ((0, nf_pad - nf), (0, 0)))                                # (Nf_pad, 32)
    fs = jnp.pad(fs_feat, ((0, nf_pad - nf), (0, 0)))                        # (Nf_pad, 16)
    neg_mask = jnp.where(jnp.arange(nt_pad) < nt, 0.0, -1e30).astype(jnp.float32)[None, :]

    # ---- stage 1: truth-side (Nt-scaled) work, computed exactly once per forward ----
    key_full, prei_full = _truth_precompute(tx, w_truth, b_truth, vmem_limit_bytes)
    key_t = key_full.T.astype(jnp.bfloat16)      # (64, Nt_pad): one-time transpose in XLA
    prei = prei_full.astype(jnp.bfloat16)        # (Nt_pad, 64): GRU input pre-activation

    # ---- stage 2: tiled fastsim-side kernel ----
    feat_out, attn_out = pl.pallas_call(
        slot_attention_kernel,
        grid=(nf_pad // tile,),
        in_specs=[
            pl.BlockSpec((tile, 2 * H), lambda i: (i, 0)),   # fsq tile
            pl.BlockSpec((tile, H), lambda i: (i, 0)),       # fs tile
            _whole(key_t.shape),                             # whole-resident keyT (bf16)
            _whole(prei.shape),                               # whole-resident pre_i (bf16)
            _whole(neg_mask.shape),
            _whole(w_main.shape),
            _whole(b_main.shape),
        ],
        out_specs=(
            pl.BlockSpec((tile, H), lambda i: (i, 0)),
            # The (tile, Nt_pad) attention map is the dominant HBM write. If it is only a
            # diagnostic downstream, drop it or emit bf16. For very large Nt with exposed
            # writeback, deepen its buffering:
            #   pl.BlockSpec((tile, nt_pad), lambda i: (i, 0), pipeline_mode=pl.Buffered(3))
            pl.BlockSpec((tile, nt_pad), lambda i: (i, 0)),
        ),
        out_shape=(jax.ShapeDtypeStruct((nf_pad, H), jnp.float32),
                   jax.ShapeDtypeStruct((nf_pad, nt_pad), jnp.float32)),
        compiler_params=pltpu.CompilerParams(
            dimension_semantics=("parallel",),       # Nf tiles are independent (v7x 2 TCs)
            vmem_limit_bytes=vmem_limit_bytes),
    )(fsq, fs, key_t, prei, neg_mask, w_main, b_main)
    return feat_out[:nf], attn_out[:nf, :nt]


# ====================== parameters / packing / reference ======================

def init_params(key):
    it = iter(jax.random.split(key, 64))

    def W(shape, scale):
        return jax.random.normal(next(it), shape, dtype=jnp.float32) * scale

    def lin(din, dout):
        s = 1.0 / math.sqrt(din)
        return W((din, dout), s), W((1, dout), s)

    params = []
    # key / values / query MLPs: Linear(in,32)-ReLU-Linear(32,32)-ReLU-Linear(32,out)
    for d_in, d_out in ((TRUTH_INPUT_SIZE + TRUTH_SKIP_SIZE, ATTN_DIM),
                        (TRUTH_INPUT_SIZE + TRUTH_SKIP_SIZE, FASTSIM_INPUT_SIZE),
                        (FASTSIM_INPUT_SIZE + TRUTH_INPUT_SIZE, ATTN_DIM)):
        w1, b1 = lin(d_in, KQV_LAYERS[0])
        w2, b2 = lin(KQV_LAYERS[0], KQV_LAYERS[1])
        w3, b3 = lin(KQV_LAYERS[1], d_out)
        params += [w1, b1, w2, b2, w3, b3]

    # GRUCell: input = fastsim values + truth skip = 24, hidden = 16 (gates r, z, n)
    gin = FASTSIM_INPUT_SIZE + TRUTH_SKIP_SIZE
    s = 1.0 / math.sqrt(H)
    params += [W((gin, H), s), W((gin, H), s), W((gin, H), s),     # wir, wiz, win
               W((1, H), s), W((1, H), s), W((1, H), s),           # bir, biz, bin
               W((H, H), s), W((H, H), s), W((H, H), s),           # whr, whz, whn
               W((1, H), s), W((1, H), s), W((1, H), s)]           # bhr, bhz, bhn

    # LayerNorm(16)
    params += [jnp.ones((1, H), jnp.float32), jnp.zeros((1, H), jnp.float32)]

    # residual MLP: Linear(16,64)-ReLU-Linear(64,16)
    mw1, mb1 = lin(H, MLP_HIDDEN)
    mw2, mb2 = lin(MLP_HIDDEN, H)
    params += [mw1, mb1, mw2, mb2]
    # TODO(synk): self.lin_weights (TrainableEltwiseLayer) and edge_attention_function are
    # defined in the module but never used by forward(), so they are intentionally omitted.
    return params


def pack_params(p):
    """Host-side packing of the 36 module parameters into 4 contiguous buffers
    (bf16 weights + f32 biases for each of the two kernels)."""
    (kW1, kb1, kW2, kb2, kW3, kb3,
     vW1, vb1, vW2, vb2, vW3, vb3,
     qW1, qb1, qW2, qb2, qW3, qb3,
     wir, wiz, win_, bir, biz, bin_,
     whr, whz, whn, bhr, bhz, bhn,
     lnw, lnb, mw1, mb1, mw2, mb2) = p
    f32, bf16 = jnp.float32, jnp.bfloat16

    def padc(x):                       # zero-pad columns to PACK_W
        return jnp.pad(x, ((0, 0), (0, PACK_W - x.shape[1])))

    def padr(x, rows):                 # zero-pad rows
        return jnp.pad(x, ((0, rows - x.shape[0]), (0, 0)))

    def z(r, c=PACK_W):
        return jnp.zeros((r, c), f32)

    wi = jnp.concatenate([wir, wiz, win_], axis=1)       # (24, 48)
    wi_v, wi_f0 = wi[:H], wi[H:]                         # values rows / features_0 rows
    wh = jnp.concatenate([whr, whz, whn], axis=1)        # (16, 48)
    b_gi = jnp.concatenate([bir, biz, bin_], axis=1)     # (1, 48)
    b_gh = jnp.concatenate([bhr, bhz, bhn], axis=1)      # (1, 48)

    # ---- truth precompute kernel (key/values MLP fused, GRU input weights folded) ----
    w_truth = jnp.concatenate([
        padr(padc(jnp.concatenate([kW1, vW1], axis=1)), 32),          # T_W1
        jnp.block([[kW2, z(32, 32)], [z(32, 32), vW2]]),              # T_W2
        jnp.concatenate([padc(kW3), z(32)], axis=0),                  # T_WK3
        jnp.concatenate([z(32), padc(vW3 @ wi_v)], axis=0),           # T_WP
        padr(jnp.concatenate([z(16), padc(wi_f0)], axis=0), 32),      # T_WPX
    ], axis=0).astype(bf16)
    b_truth = jnp.concatenate([
        padc(jnp.concatenate([kb1, vb1], axis=1)),                    # BT_1
        padc(jnp.concatenate([kb2, vb2], axis=1)),                    # BT_2
        padc(kb3),                                                    # BT_K3
        padc(vb3 @ wi_v),                                             # BT_P
    ], axis=0).astype(f32)

    # ---- tiled fastsim kernel ----
    w_main = jnp.concatenate([
        padc(qW1),                          # M_Q1
        padr(padc(qW2), 64),                # M_Q2
        padr(padc(qW3 * NORM), 64),         # M_Q3  (1/sqrt(30) folded in)
        padc(wh),                           # M_WH
        mw1,                                # M_M1 (already (16, 64))
        padc(mw2),                          # M_M2
    ], axis=0).astype(bf16)
    b_main = jnp.concatenate([
        padc(qb1), padc(qb2), padc(qb3 * NORM),
        padc(b_gi), padc(b_gh),
        padc(lnw), padc(lnb),
        mb1, padc(mb2),
    ], axis=0).astype(f32)

    assert w_truth.shape == (T_WPX[1], PACK_W) and b_truth.shape == (4, PACK_W)
    assert w_main.shape == (M_M2[1], PACK_W) and b_main.shape == (9, PACK_W)
    return w_truth, b_truth, w_main, b_main


def ref_forward(truth_feat, truth_feat0, fs_feat, fs_glob, p):
    """Pure-JAX f32 reference with the exact SlotAttention.forward semantics."""
    (kW1, kb1, kW2, kb2, kW3, kb3,
     vW1, vb1, vW2, vb2, vW3, vb3,
     qW1, qb1, qW2, qb2, qW3, qb3,
     wir, wiz, win_, bir, biz, bin_,
     whr, whz, whn, bhr, bhz, bhn,
     lnw, lnb, mw1, mb1, mw2, mb2) = p

    def mlp3(x, W1, b1, W2, b2, W3, b3):
        h = jnp.maximum(x @ W1 + b1, 0.0)
        h = jnp.maximum(h @ W2 + b2, 0.0)
        return h @ W3 + b3

    x_truth = jnp.concatenate([truth_feat, truth_feat0], axis=1)
    key = mlp3(x_truth, kW1, kb1, kW2, kb2, kW3, kb3)
    values = mlp3(x_truth, vW1, vb1, vW2, vb2, vW3, vb3)
    query = mlp3(jnp.concatenate([fs_feat, fs_glob], axis=1), qW1, qb1, qW2, qb2, qW3, qb3)
    attn = jax.nn.softmax((query @ key.T) * NORM, axis=1)
    weighted = attn @ jnp.concatenate([values, truth_feat0], axis=1)
    h = fs_feat
    r = jax.nn.sigmoid(weighted @ wir + bir + h @ whr + bhr)
    z = jax.nn.sigmoid(weighted @ wiz + biz + h @ whz + bhz)
    n = jnp.tanh(weighted @ win_ + bin_ + r * (h @ whn + bhn))
    h_new = (1.0 - z) * n + z * h
    mu = jnp.mean(h_new, axis=1, keepdims=True)
    var = jnp.mean((h_new - mu) ** 2, axis=1, keepdims=True)
    ln = (h_new - mu) / jnp.sqrt(var + LN_EPS) * lnw + lnb
    mo = jnp.maximum(ln @ mw1 + mb1, 0.0) @ mw2 + mb2
    return h + mo, attn


if __name__ == "__main__":
    root = jax.random.PRNGKey(0)
    k1, k2, k3, k4, kp = jax.random.split(root, 5)
    Nt, Nf = 20, 24   # truth particles, fastsim particles (small demo shapes)

    truth_feat = jax.random.normal(k1, (Nt, TRUTH_INPUT_SIZE), jnp.float32)
    truth_feat0 = jax.random.normal(k2, (Nt, TRUTH_SKIP_SIZE), jnp.float32)
    fs_feat = jax.random.normal(k3, (Nf, FASTSIM_INPUT_SIZE), jnp.float32)
    fs_glob = jax.random.normal(k4, (Nf, TRUTH_INPUT_SIZE), jnp.float32)

    params = init_params(kp)
    packed = pack_params(params)

    fwd = jax.jit(lambda a, b, c, d: slot_attention_forward(a, b, c, d, packed))
    feat_out, attn_out = fwd(truth_feat, truth_feat0, fs_feat, fs_glob)
    jax.block_until_ready((feat_out, attn_out))

    ref_feat, ref_attn = ref_forward(truth_feat, truth_feat0, fs_feat, fs_glob, params)
    assert feat_out.shape == (Nf, FASTSIM_INPUT_SIZE) and attn_out.shape == (Nf, Nt)
    # tolerances absorb the bf16 MXU matmuls and the EUP approximate softmax reciprocal
    assert jnp.allclose(attn_out, ref_attn, atol=1e-2, rtol=1e-2)
    assert jnp.allclose(feat_out, ref_feat, atol=7.5e-2, rtol=5e-2)
    print("KERNEL_OK")
</pallas_src>

<mosaic_0001>
module attributes {stable_mosaic.version = 11 : i64} {
  func.func @truth_precompute_kernel(%arg0: i32, %arg1: memref<128x32xf32, #tpu.memory_space<vmem>>, %arg2: memref<256x64xbf16, #tpu.memory_space<vmem>>, %arg3: memref<4x64xf32, #tpu.memory_space<vmem>>, %arg4: memref<128x64xf32, #tpu.memory_space<vmem>>, %arg5: memref<128x64xf32, #tpu.memory_space<vmem>>) attributes {dimension_semantics = [#tpu.dimension_semantics<arbitrary>], iteration_bounds = array<i64: 1>, scalar_prefetch = 0 : i64, scratch_operands = 0 : i64, tpu.core_type = #tpu.core_type<tc>, window_params = [{pipeline_mode = #tpu.pipeline_mode<synchronous>, transform_indices = @transform_0, window_bounds = array<i64: 128, 32>}, {pipeline_mode = #tpu.pipeline_mode<synchronous>, transform_indices = @transform_1, window_bounds = array<i64: 256, 64>}, {pipeline_mode = #tpu.pipeline_mode<synchronous>, transform_indices = @transform_2, window_bounds = array<i64: 4, 64>}, {pipeline_mode = #tpu.pipeline_mode<synchronous>, transform_indices = @transform_3, window_bounds = array<i64: 128, 64>}, {pipeline_mode = #tpu.pipeline_mode<synchronous>, transform_indices = @transform_4, window_bounds = array<i64: 128, 64>}]} {
    %c0 = arith.constant 0 : index
    %c0_0 = arith.constant 0 : index
    %0 = vector.load %arg1[%c0, %c0_0] : memref<128x32xf32, #tpu.memory_space<vmem>>, vector<128x32xf32>
    %1 = arith.truncf %0 : vector<128x32xf32> to vector<128x32xbf16>
    %c0_1 = arith.constant 0 : index
    %c0_2 = arith.constant 0 : index
    %2 = vector.load %arg2[%c0_1, %c0_2] : memref<256x64xbf16, #tpu.memory_space<vmem>>, vector<32x64xbf16>
    %cst = arith.constant dense<0.000000e+00> : vector<128x64xf32>
    %3 = tpu.matmul %1, %2, %cst {dimension_numbers = #tpu.dot_dimension_numbers<[1], [0], [0], [1], [0, 0, 1, 1], [], []>} : vector<128x32xbf16>, vector<32x64xbf16>, vector<128x64xf32> -> vector<128x64xf32>
    %c0_3 = arith.constant 0 : index
    %c0_4 = arith.constant 0 : index
    %4 = vector.load %arg3[%c0_3, %c0_4] : memref<4x64xf32, #tpu.memory_space<vmem>>, vector<1x64xf32>
    %5 = vector.broadcast %4 : vector<1x64xf32> to vector<128x64xf32>
    %6 = arith.addf %3, %5 : vector<128x64xf32>
    %cst_5 = arith.constant 0.000000e+00 : f32
    %7 = vector.broadcast %cst_5 : f32 to vector<128x64xf32>
    %8 = arith.maximumf %6, %7 : vector<128x64xf32>
    %9 = arith.truncf %8 : vector<128x64xf32> to vector<128x64xbf16>
    %c32 = arith.constant 32 : index
    %c0_6 = arith.constant 0 : index
    %10 = vector.load %arg2[%c32, %c0_6] : memref<256x64xbf16, #tpu.memory_space<vmem>>, vector<64x64xbf16>
    %cst_7 = arith.constant dense<0.000000e+00> : vector<128x64xf32>
    %11 = tpu.matmul %9, %10, %cst_7 {dimension_numbers = #tpu.dot_dimension_numbers<[1], [0], [0], [1], [0, 0, 1, 1], [], []>} : vector<128x64xbf16>, vector<64x64xbf16>, vector<128x64xf32> -> vector<128x64xf32>
    %c1 = arith.constant 1 : index
    %c0_8 = arith.constant 0 : index
    %12 = vector.load %arg3[%c1, %c0_8] : memref<4x64xf32, #tpu.memory_space<vmem>>, vector<1x64xf32>
    %13 = vector.broadcast %12 : vector<1x64xf32> to vector<128x64xf32>
    %14 = arith.addf %11, %13 : vector<128x64xf32>
    %cst_9 = arith.constant 0.000000e+00 : f32
    %15 = vector.broadcast %cst_9 : f32 to vector<128x64xf32>
    %16 = arith.maximumf %14, %15 : vector<128x64xf32>
    %17 = arith.truncf %16 : vector<128x64xf32> to vector<128x64xbf16>
    %c96 = arith.constant 96 : index
    %c0_10 = arith.constant 0 : index
    %18 = vector.load %arg2[%c96, %c0_10] : memref<256x64xbf16, #tpu.memory_space<vmem>>, vector<64x64xbf16>
    %cst_11 = arith.constant dense<0.000000e+00> : vector<128x64xf32>
    %19 = tpu.matmul %17, %18, %cst_11 {dimension_numbers = #tpu.dot_dimension_numbers<[1], [0], [0], [1], [0, 0, 1, 1], [], []>} : vector<128x64xbf16>, vector<64x64xbf16>, vector<128x64xf32> -> vector<128x64xf32>
    %c2 = arith.constant 2 : index
    %c0_12 = arith.constant 0 : index
    %20 = vector.load %arg3[%c2, %c0_12] : memref<4x64xf32, #tpu.memory_space<vmem>>, vector<1x64xf32>
    %21 = vector.broadcast %20 : vector<1x64xf32> to vector<128x64xf32>
    %22 = arith.addf %19, %21 : vector<128x64xf32>
    %c0_13 = arith.constant 0 : index
    %c0_14 = arith.constant 0 : index
    %23 = vector.load %arg4[%c0_13, %c0_14] : memref<128x64xf32, #tpu.memory_space<vmem>>, vector<128x64xf32>
    tpu.vector_store %arg4[%c0_13, %c0_14], %22 {strides = array<i32>} : memref<128x64xf32, #tpu.memory_space<vmem>>, vector<128x64xf32>,
    %c160 = arith.constant 160 : index
    %c0_15 = arith.constant 0 : index
    %24 = vector.load %arg2[%c160, %c0_15] : memref<256x64xbf16, #tpu.memory_space<vmem>>, vector<64x64xbf16>
    %cst_16 = arith.constant dense<0.000000e+00> : vector<128x64xf32>
    %25 = tpu.matmul %17, %24, %cst_16 {dimension_numbers = #tpu.dot_dimension_numbers<[1], [0], [0], [1], [0, 0, 1, 1], [], []>} : vector<128x64xbf16>, vector<64x64xbf16>, vector<128x64xf32> -> vector<128x64xf32>
    %c224 = arith.constant 224 : index
    %c0_17 = arith.constant 0 : index
    %26 = vector.load %arg2[%c224, %c0_17] : memref<256x64xbf16, #tpu.memory_space<vmem>>, vector<32x64xbf16>
    %cst_18 = arith.constant dense<0.000000e+00> : vector<128x64xf32>
    %27 = tpu.matmul %1, %26, %cst_18 {dimension_numbers = #tpu.dot_dimension_numbers<[1], [0], [0], [1], [0, 0, 1, 1], [], []>} : vector<128x32xbf16>, vector<32x64xbf16>, vector<128x64xf32> -> vector<128x64xf32>
    %28 = arith.addf %25, %27 : vector<128x64xf32>
    %c3 = arith.constant 3 : index
    %c0_19 = arith.constant 0 : index
    %29 = vector.load %arg3[%c3, %c0_19] : memref<4x64xf32, #tpu.memory_space<vmem>>, vector<1x64xf32>
    %30 = vector.broadcast %29 : vector<1x64xf32> to vector<128x64xf32>
    %31 = arith.addf %28, %30 : vector<128x64xf32>
    %c0_20 = arith.constant 0 : index
    %c0_21 = arith.constant 0 : index
    %32 = vector.load %arg5[%c0_20, %c0_21] : memref<128x64xf32, #tpu.memory_space<vmem>>, vector<128x64xf32>
    tpu.vector_store %arg5[%c0_20, %c0_21], %31 {strides = array<i32>} : memref<128x64xf32, #tpu.memory_space<vmem>>, vector<128x64xf32>,
    return
  }
  func.func @transform_0(%arg0: i32) -> (i32, i32) {
    %c0_i32 = arith.constant 0 : i32
    %c0_i32_0 = arith.constant 0 : i32
    %c0_i32_1 = arith.constant 0 : i32
    return %c0_i32, %c0_i32_0 : i32, i32
  }
  func.func @transform_1(%arg0: i32) -> (i32, i32) {
    %c0_i32 = arith.constant 0 : i32
    %c0_i32_0 = arith.constant 0 : i32
    %c0_i32_1 = arith.constant 0 : i32
    return %c0_i32, %c0_i32_0 : i32, i32
  }
  func.func @transform_2(%arg0: i32) -> (i32, i32) {
    %c0_i32 = arith.constant 0 : i32
    %c0_i32_0 = arith.constant 0 : i32
    %c0_i32_1 = arith.constant 0 : i32
    return %c0_i32, %c0_i32_0 : i32, i32
  }
  func.func @transform_3(%arg0: i32) -> (i32, i32) {
    %c0_i32 = arith.constant 0 : i32
    %c0_i32_0 = arith.constant 0 : i32
    %c0_i32_1 = arith.constant 0 : i32
    return %c0_i32, %c0_i32_0 : i32, i32
  }
  func.func @transform_4(%arg0: i32) -> (i32, i32) {
    %c0_i32 = arith.constant 0 : i32
    %c0_i32_0 = arith.constant 0 : i32
    %c0_i32_1 = arith.constant 0 : i32
    return %c0_i32, %c0_i32_0 : i32, i32
  }
}

module attributes {stable_mosaic.version = 11 : i64} {
  func.func @slot_attention_kernel(%arg0: i32, %arg1: memref<16x32xf32, #tpu.memory_space<vmem>>, %arg2: memref<16x16xf32, #tpu.memory_space<vmem>>, %arg3: memref<64x128xbf16, #tpu.memory_space<vmem>>, %arg4: memref<128x64xbf16, #tpu.memory_space<vmem>>, %arg5: memref<1x128xf32, #tpu.memory_space<vmem>>, %arg6: memref<256x64xbf16, #tpu.memory_space<vmem>>, %arg7: memref<9x64xf32, #tpu.memory_space<vmem>>, %arg8: memref<16x16xf32, #tpu.memory_space<vmem>>, %arg9: memref<16x128xf32, #tpu.memory_space<vmem>>) attributes {dimension_semantics = [#tpu.dimension_semantics<parallel>], iteration_bounds = array<i64: 2>, scalar_prefetch = 0 : i64, scratch_operands = 0 : i64, tpu.core_type = #tpu.core_type<tc>, window_params = [{transform_indices = @transform_0, window_bounds = array<i64: 16, 32>}, {transform_indices = @transform_1, window_bounds = array<i64: 16, 16>}, {pipeline_mode = #tpu.pipeline_mode<synchronous>, transform_indices = @transform_2, window_bounds = array<i64: 64, 128>}, {pipeline_mode = #tpu.pipeline_mode<synchronous>, transform_indices = @transform_3, window_bounds = array<i64: 128, 64>}, {pipeline_mode = #tpu.pipeline_mode<synchronous>, transform_indices = @transform_4, window_bounds = array<i64: 1, 128>}, {pipeline_mode = #tpu.pipeline_mode<synchronous>, transform_indices = @transform_5, window_bounds = array<i64: 256, 64>}, {pipeline_mode = #tpu.pipeline_mode<synchronous>, transform_indices = @transform_6, window_bounds = array<i64: 9, 64>}, {transform_indices = @transform_7, window_bounds = array<i64: 16, 16>}, {transform_indices = @transform_8, window_bounds = array<i64: 16, 128>}]} {
    %c0 = arith.constant 0 : index
    %c0_0 = arith.constant 0 : index
    %0 = vector.load %arg1[%c0, %c0_0] : memref<16x32xf32, #tpu.memory_space<vmem>>, vector<16x32xf32>
    %c0_1 = arith.constant 0 : index
    %c0_2 = arith.constant 0 : index
    %1 = vector.load %arg2[%c0_1, %c0_2] : memref<16x16xf32, #tpu.memory_space<vmem>>, vector<16x16xf32>
    %2 = arith.truncf %0 : vector<16x32xf32> to vector<16x32xbf16>
    %c0_3 = arith.constant 0 : index
    %c0_4 = arith.constant 0 : index
    %3 = vector.load %arg6[%c0_3, %c0_4] : memref<256x64xbf16, #tpu.memory_space<vmem>>, vector<32x64xbf16>
    %cst = arith.constant dense<0.000000e+00> : vector<16x64xf32>
    %4 = tpu.matmul %2, %3, %cst {dimension_numbers = #tpu.dot_dimension_numbers<[1], [0], [0], [1], [0, 0, 1, 1], [], []>} : vector<16x32xbf16>, vector<32x64xbf16>, vector<16x64xf32> -> vector<16x64xf32>
    %c0_5 = arith.constant 0 : index
    %c0_6 = arith.constant 0 : index
    %5 = vector.load %arg7[%c0_5, %c0_6] : memref<9x64xf32, #tpu.memory_space<vmem>>, vector<1x64xf32>
    %6 = vector.broadcast %5 : vector<1x64xf32> to vector<16x64xf32>
    %7 = arith.addf %4, %6 : vector<16x64xf32>
    %cst_7 = arith.constant 0.000000e+00 : f32
    %8 = vector.broadcast %cst_7 : f32 to vector<16x64xf32>
    %9 = arith.maximumf %7, %8 : vector<16x64xf32>
    %10 = arith.truncf %9 : vector<16x64xf32> to vector<16x64xbf16>
    %c32 = arith.constant 32 : index
    %c0_8 = arith.constant 0 : index
    %11 = vector.load %arg6[%c32, %c0_8] : memref<256x64xbf16, #tpu.memory_space<vmem>>, vector<64x64xbf16>
    %cst_9 = arith.constant dense<0.000000e+00> : vector<16x64xf32>
    %12 = tpu.matmul %10, %11, %cst_9 {dimension_numbers = #tpu.dot_dimension_numbers<[1], [0], [0], [1], [0, 0, 1, 1], [], []>} : vector<16x64xbf16>, vector<64x64xbf16>, vector<16x64xf32> -> vector<16x64xf32>
    %c1 = arith.constant 1 : index
    %c0_10 = arith.constant 0 : index
    %13 = vector.load %arg7[%c1, %c0_10] : memref<9x64xf32, #tpu.memory_space<vmem>>, vector<1x64xf32>
    %14 = vector.broadcast %13 : vector<1x64xf32> to vector<16x64xf32>
    %15 = arith.addf %12, %14 : vector<16x64xf32>
    %cst_11 = arith.constant 0.000000e+00 : f32
    %16 = vector.broadcast %cst_11 : f32 to vector<16x64xf32>
    %17 = arith.maximumf %15, %16 : vector<16x64xf32>
    %18 = arith.truncf %17 : vector<16x64xf32> to vector<16x64xbf16>
    %c96 = arith.constant 96 : index
    %c0_12 = arith.constant 0 : index
    %19 = vector.load %arg6[%c96, %c0_12] : memref<256x64xbf16, #tpu.memory_space<vmem>>, vector<64x64xbf16>
    %cst_13 = arith.constant dense<0.000000e+00> : vector<16x64xf32>
    %20 = tpu.matmul %18, %19, %cst_13 {dimension_numbers = #tpu.dot_dimension_numbers<[1], [0], [0], [1], [0, 0, 1, 1], [], []>} : vector<16x64xbf16>, vector<64x64xbf16>, vector<16x64xf32> -> vector<16x64xf32>
    %c2 = arith.constant 2 : index
    %c0_14 = arith.constant 0 : index
    %21 = vector.load %arg7[%c2, %c0_14] : memref<9x64xf32, #tpu.memory_space<vmem>>, vector<1x64xf32>
    %22 = vector.broadcast %21 : vector<1x64xf32> to vector<16x64xf32>
    %23 = arith.addf %20, %22 : vector<16x64xf32>
    %24 = arith.truncf %23 : vector<16x64xf32> to vector<16x64xbf16>
    %c0_15 = arith.constant 0 : index
    %c0_16 = arith.constant 0 : index
    %25 = vector.load %arg3[%c0_15, %c0_16] : memref<64x128xbf16, #tpu.memory_space<vmem>>, vector<64x128xbf16>
    %cst_17 = arith.constant dense<0.000000e+00> : vector<16x128xf32>
    %26 = tpu.matmul %24, %25, %cst_17 {dimension_numbers = #tpu.dot_dimension_numbers<[1], [0], [0], [1], [0, 0, 1, 1], [], []>} : vector<16x64xbf16>, vector<64x128xbf16>, vector<16x128xf32> -> vector<16x128xf32>
    %c0_18 = arith.constant 0 : index
    %c0_19 = arith.constant 0 : index
    %27 = vector.load %arg5[%c0_18, %c0_19] : memref<1x128xf32, #tpu.memory_space<vmem>>, vector<1x128xf32>
    %28 = vector.broadcast %27 : vector<1x128xf32> to vector<16x128xf32>
    %29 = arith.addf %26, %28 : vector<16x128xf32>
    %cst_20 = arith.constant dense<0xFF800000> : vector<16xf32>
    %30 = vector.multi_reduction <maximumf>, %29, %cst_20 [1] : vector<16x128xf32> to vector<16xf32>
    %31 = vector.shape_cast %30 : vector<16xf32> to vector<16x1xf32>
    %32 = vector.broadcast %31 : vector<16x1xf32> to vector<16x128xf32>
    %33 = arith.subf %29, %32 : vector<16x128xf32>
    %34 = math.exp %33 : vector<16x128xf32>
    %cst_21 = arith.constant dense<0.000000e+00> : vector<16xf32>
    %35 = vector.multi_reduction <add>, %34, %cst_21 [1] : vector<16x128xf32> to vector<16xf32>
    %36 = vector.shape_cast %35 : vector<16xf32> to vector<16x1xf32>
    %37 = tpu.reciprocal %36 {approx = true} : vector<16x1xf32> -> vector<16x1xf32>
    %38 = vector.broadcast %37 : vector<16x1xf32> to vector<16x128xf32>
    %39 = arith.mulf %34, %38 : vector<16x128xf32>
    %c0_22 = arith.constant 0 : index
    %c0_23 = arith.constant 0 : index
    %40 = vector.load %arg9[%c0_22, %c0_23] : memref<16x128xf32, #tpu.memory_space<vmem>>, vector<16x128xf32>
    tpu.vector_store %arg9[%c0_22, %c0_23], %39 {strides = array<i32>} : memref<16x128xf32, #tpu.memory_space<vmem>>, vector<16x128xf32>,
    %41 = arith.truncf %39 : vector<16x128xf32> to vector<16x128xbf16>
    %c0_24 = arith.constant 0 : index
    %c0_25 = arith.constant 0 : index
    %42 = vector.load %arg4[%c0_24, %c0_25] : memref<128x64xbf16, #tpu.memory_space<vmem>>, vector<128x64xbf16>
    %cst_26 = arith.constant dense<0.000000e+00> : vector<16x64xf32>
    %43 = tpu.matmul %41, %42, %cst_26 {dimension_numbers = #tpu.dot_dimension_numbers<[1], [0], [0], [1], [0, 0, 1, 1], [], []>} : vector<16x128xbf16>, vector<128x64xbf16>, vector<16x64xf32> -> vector<16x64xf32>
    %c3 = arith.constant 3 : index
    %c0_27 = arith.constant 0 : index
    %44 = vector.load %arg7[%c3, %c0_27] : memref<9x64xf32, #tpu.memory_space<vmem>>, vector<1x64xf32>
    %45 = vector.broadcast %44 : vector<1x64xf32> to vector<16x64xf32>
    %46 = arith.addf %43, %45 : vector<16x64xf32>
    %47 = arith.truncf %1 : vector<16x16xf32> to vector<16x16xbf16>
    %c160 = arith.constant 160 : index
    %c0_28 = arith.constant 0 : index
    %48 = vector.load %arg6[%c160, %c0_28] : memref<256x64xbf16, #tpu.memory_space<vmem>>, vector<16x64xbf16>
    %cst_29 = arith.constant dense<0.000000e+00> : vector<16x64xf32>
    %49 = tpu.matmul %47, %48, %cst_29 {dimension_numbers = #tpu.dot_dimension_numbers<[1], [0], [0], [1], [0, 0, 1, 1], [], []>} : vector<16x16xbf16>, vector<16x64xbf16>, vector<16x64xf32> -> vector<16x64xf32>
    %c4 = arith.constant 4 : index
    %c0_30 = arith.constant 0 : index
    %50 = vector.load %arg7[%c4, %c0_30] : memref<9x64xf32, #tpu.memory_space<vmem>>, vector<1x64xf32>
    %51 = vector.broadcast %50 : vector<1x64xf32> to vector<16x64xf32>
    %52 = arith.addf %49, %51 : vector<16x64xf32>
    %53 = vector.extract_strided_slice %46 {offsets = [0, 0], sizes = [16, 16], strides = [1, 1]} : vector<16x64xf32> to vector<16x16xf32>
    %54 = vector.extract_strided_slice %52 {offsets = [0, 0], sizes = [16, 16], strides = [1, 1]} : vector<16x64xf32> to vector<16x16xf32>
    %55 = arith.addf %53, %54 : vector<16x16xf32>
    %56 = arith.negf %55 : vector<16x16xf32>
    %57 = math.exp %56 : vector<16x16xf32>
    %cst_31 = arith.constant 1.000000e+00 : f32
    %58 = vector.broadcast %cst_31 : f32 to vector<16x16xf32>
    %59 = arith.addf %58, %57 : vector<16x16xf32>
    %60 = arith.divf %58, %59 : vector<16x16xf32>
    %61 = vector.extract_strided_slice %46 {offsets = [0, 16], sizes = [16, 16], strides = [1, 1]} : vector<16x64xf32> to vector<16x16xf32>
    %62 = vector.extract_strided_slice %52 {offsets = [0, 16], sizes = [16, 16], strides = [1, 1]} : vector<16x64xf32> to vector<16x16xf32>
    %63 = arith.addf %61, %62 : vector<16x16xf32>
    %64 = arith.negf %63 : vector<16x16xf32>
    %65 = math.exp %64 : vector<16x16xf32>
    %cst_32 = arith.constant 1.000000e+00 : f32
    %66 = vector.broadcast %cst_32 : f32 to vector<16x16xf32>
    %67 = arith.addf %66, %65 : vector<16x16xf32>
    %68 = arith.divf %66, %67 : vector<16x16xf32>
    %69 = vector.extract_strided_slice %46 {offsets = [0, 32], sizes = [16, 16], strides = [1, 1]} : vector<16x64xf32> to vector<16x16xf32>
    %70 = vector.extract_strided_slice %52 {offsets = [0, 32], sizes = [16, 16], strides = [1, 1]} : vector<16x64xf32> to vector<16x16xf32>
    %71 = arith.mulf %60, %70 : vector<16x16xf32>
    %72 = arith.addf %69, %71 : vector<16x16xf32>
    %73 = math.tanh %72 : vector<16x16xf32>
    %cst_33 = arith.constant 1.000000e+00 : f32
    %74 = vector.broadcast %cst_33 : f32 to vector<16x16xf32>
    %75 = arith.subf %74, %68 : vector<16x16xf32>
    %76 = arith.mulf %75, %73 : vector<16x16xf32>
    %77 = arith.mulf %68, %1 : vector<16x16xf32>
    %78 = arith.addf %76, %77 : vector<16x16xf32>
    %cst_34 = arith.constant dense<0.000000e+00> : vector<16xf32>
    %79 = vector.multi_reduction <add>, %78, %cst_34 [1] : vector<16x16xf32> to vector<16xf32>
    %80 = vector.shape_cast %79 : vector<16xf32> to vector<16x1xf32>
    %cst_35 = arith.constant 1.600000e+01 : f32
    %81 = vector.broadcast %cst_35 : f32 to vector<16x1xf32>
    %82 = arith.divf %80, %81 : vector<16x1xf32>
    %83 = vector.broadcast %82 : vector<16x1xf32> to vector<16x16xf32>
    %84 = arith.subf %78, %83 : vector<16x16xf32>
    %85 = vector.broadcast %82 : vector<16x1xf32> to vector<16x16xf32>
    %86 = arith.subf %78, %85 : vector<16x16xf32>
    %87 = arith.mulf %84, %86 : vector<16x16xf32>
    %cst_36 = arith.constant dense<0.000000e+00> : vector<16xf32>
    %88 = vector.multi_reduction <add>, %87, %cst_36 [1] : vector<16x16xf32> to vector<16xf32>
    %89 = vector.shape_cast %88 : vector<16xf32> to vector<16x1xf32>
    %cst_37 = arith.constant 1.600000e+01 : f32
    %90 = vector.broadcast %cst_37 : f32 to vector<16x1xf32>
    %91 = arith.divf %89, %90 : vector<16x1xf32>
    %92 = vector.broadcast %82 : vector<16x1xf32> to vector<16x16xf32>
    %93 = arith.subf %78, %92 : vector<16x16xf32>
    %cst_38 = arith.constant 9.99999974E-6 : f32
    %94 = vector.broadcast %cst_38 : f32 to vector<16x1xf32>
    %95 = arith.addf %91, %94 : vector<16x1xf32>
    %96 = math.rsqrt %95 : vector<16x1xf32>
    %97 = vector.broadcast %96 : vector<16x1xf32> to vector<16x16xf32>
    %98 = arith.mulf %93, %97 : vector<16x16xf32>
    %c5 = arith.constant 5 : index
    %c0_39 = arith.constant 0 : index
    %99 = vector.load %arg7[%c5, %c0_39] : memref<9x64xf32, #tpu.memory_space<vmem>>, vector<1x16xf32>
    %100 = vector.broadcast %99 : vector<1x16xf32> to vector<16x16xf32>
    %101 = arith.mulf %98, %100 : vector<16x16xf32>
    %c6 = arith.constant 6 : index
    %c0_40 = arith.constant 0 : index
    %102 = vector.load %arg7[%c6, %c0_40] : memref<9x64xf32, #tpu.memory_space<vmem>>, vector<1x16xf32>
    %103 = vector.broadcast %102 : vector<1x16xf32> to vector<16x16xf32>
    %104 = arith.addf %101, %103 : vector<16x16xf32>
    %105 = arith.truncf %104 : vector<16x16xf32> to vector<16x16xbf16>
    %c176 = arith.constant 176 : index
    %c0_41 = arith.constant 0 : index
    %106 = vector.load %arg6[%c176, %c0_41] : memref<256x64xbf16, #tpu.memory_space<vmem>>, vector<16x64xbf16>
    %cst_42 = arith.constant dense<0.000000e+00> : vector<16x64xf32>
    %107 = tpu.matmul %105, %106, %cst_42 {dimension_numbers = #tpu.dot_dimension_numbers<[1], [0], [0], [1], [0, 0, 1, 1], [], []>} : vector<16x16xbf16>, vector<16x64xbf16>, vector<16x64xf32> -> vector<16x64xf32>
    %c7 = arith.constant 7 : index
    %c0_43 = arith.constant 0 : index
    %108 = vector.load %arg7[%c7, %c0_43] : memref<9x64xf32, #tpu.memory_space<vmem>>, vector<1x64xf32>
    %109 = vector.broadcast %108 : vector<1x64xf32> to vector<16x64xf32>
    %110 = arith.addf %107, %109 : vector<16x64xf32>
    %cst_44 = arith.constant 0.000000e+00 : f32
    %111 = vector.broadcast %cst_44 : f32 to vector<16x64xf32>
    %112 = arith.maximumf %110, %111 : vector<16x64xf32>
    %113 = arith.truncf %112 : vector<16x64xf32> to vector<16x64xbf16>
    %c192 = arith.constant 192 : index
    %c0_45 = arith.constant 0 : index
    %114 = vector.load %arg6[%c192, %c0_45] : memref<256x64xbf16, #tpu.memory_space<vmem>>, vector<64x64xbf16>
    %cst_46 = arith.constant dense<0.000000e+00> : vector<16x64xf32>
    %115 = tpu.matmul %113, %114, %cst_46 {dimension_numbers = #tpu.dot_dimension_numbers<[1], [0], [0], [1], [0, 0, 1, 1], [], []>} : vector<16x64xbf16>, vector<64x64xbf16>, vector<16x64xf32> -> vector<16x64xf32>
    %c8 = arith.constant 8 : index
    %c0_47 = arith.constant 0 : index
    %116 = vector.load %arg7[%c8, %c0_47] : memref<9x64xf32, #tpu.memory_space<vmem>>, vector<1x64xf32>
    %117 = vector.broadcast %116 : vector<1x64xf32> to vector<16x64xf32>
    %118 = arith.addf %115, %117 : vector<16x64xf32>
    %119 = vector.extract_strided_slice %118 {offsets = [0, 0], sizes = [16, 16], strides = [1, 1]} : vector<16x64xf32> to vector<16x16xf32>
    %120 = arith.addf %1, %119 : vector<16x16xf32>
    %c0_48 = arith.constant 0 : index
    %c0_49 = arith.constant 0 : index
    %121 = vector.load %arg8[%c0_48, %c0_49] : memref<16x16xf32, #tpu.memory_space<vmem>>, vector<16x16xf32>
    tpu.vector_store %arg8[%c0_48, %c0_49], %120 {strides = array<i32>} : memref<16x16xf32, #tpu.memory_space<vmem>>, vector<16x16xf32>,
    return
  }
  func.func @transform_0(%arg0: i32) -> (i32, i32) {
    %c0_i32 = arith.constant 0 : i32
    %c0_i32_0 = arith.constant 0 : i32
    return %arg0, %c0_i32 : i32, i32
  }
  func.func @transform_1(%arg0: i32) -> (i32, i32) {
    %c0_i32 = arith.constant 0 : i32
    %c0_i32_0 = arith.constant 0 : i32
    return %arg0, %c0_i32 : i32, i32
  }
  func.func @transform_2(%arg0: i32) -> (i32, i32) {
    %c0_i32 = arith.constant 0 : i32
    %c0_i32_0 = arith.constant 0 : i32
    %c0_i32_1 = arith.constant 0 : i32
    return %c0_i32, %c0_i32_0 : i32, i32
  }
  func.func @transform_3(%arg0: i32) -> (i32, i32) {
    %c0_i32 = arith.constant 0 : i32
    %c0_i32_0 = arith.constant 0 : i32
    %c0_i32_1 = arith.constant 0 : i32
    return %c0_i32, %c0_i32_0 : i32, i32
  }
  func.func @transform_4(%arg0: i32) -> (i32, i32) {
    %c0_i32 = arith.constant 0 : i32
    %c0_i32_0 = arith.constant 0 : i32
    %c0_i32_1 = arith.constant 0 : i32
    return %c0_i32, %c0_i32_0 : i32, i32
  }
  func.func @transform_5(%arg0: i32) -> (i32, i32) {
    %c0_i32 = arith.constant 0 : i32
    %c0_i32_0 = arith.constant 0 : i32
    %c0_i32_1 = arith.constant 0 : i32
    return %c0_i32, %c0_i32_0 : i32, i32
  }
  func.func @transform_6(%arg0: i32) -> (i32, i32) {
    %c0_i32 = arith.constant 0 : i32
    %c0_i32_0 = arith.constant 0 : i32
    %c0_i32_1 = arith.constant 0 : i32
    return %c0_i32, %c0_i32_0 : i32, i32
  }
  func.func @transform_7(%arg0: i32) -> (i32, i32) {
    %c0_i32 = arith.constant 0 : i32
    %c0_i32_0 = arith.constant 0 : i32
    return %arg0, %c0_i32 : i32, i32
  }
  func.func @transform_8(%arg0: i32) -> (i32, i32) {
    %c0_i32 = arith.constant 0 : i32
    %c0_i32_0 = arith.constant 0 : i32
    return %arg0, %c0_i32 : i32, i32
  }
}

</mosaic_0001>

<bundles_post_ra>
// kernel: _lambda_.2
= control target key start
LH: loop header
LB: loop body
LE: loop exit
PB: predicated region body
PF: predicated region fallthrough
CT: control target
= control target key end

     0   :  { %vm62_vm0 = vcmask 261120   ;;  %vm245_vm1 = vcmask 523264   ;;  %s1469_s1 = inlined_call_operand.vmem [shape: bf16[256,64], index: 1, kind: input, shape index: {}]   ;;  %s1470_s0 = inlined_call_operand.vmem [shape: f32[128,32], index: 0, kind: input, shape index: {}]   ;;  %s1471_s2 = inlined_call_operand.vmem [shape: f32[4,64], index: 2, kind: input, shape index: {}]   ;;  %s1472_s3 = inlined_call_operand.vmem [shape: f32[128,64], index: 3, kind: output, shape index: {0}]   ;;  %s1473_s4 = inlined_call_operand.vmem [shape: f32[128,64], index: 4, kind: output, shape index: {1}]  }
   0x1   :  { %v1084_v0 = vld [vmem:[%s1469_s1 + $0x8] sm:$0xff]   ;;  %v1085_v1 = vld [vmem:[%s1469_s1] sm:$0xff]   ;;  %v19_v5 = vld [vmem:[%s1470_s0 + $0x10] sm:$0xff] }
   0x2   :  { %968 = vmatprep.subr.bf16.mxu0 %v1084_v0  ;;  %v17_v2 = vld [vmem:[%s1470_s0] sm:$0xff]  ;;  %v18_v3 = vld [vmem:[%s1470_s0 + $0x8] sm:$0xff]  ;;  %1080 = vmatprep.subr.bf16.mxu1 %v1084_v0  ;;  %v20_v6 = vld [vmem:[%s1470_s0 + $0x18] sm:$0xff] }
   0x3   :  { %969 = vmatpush3.bf16.msra.mxu0 %v1084_v0  ;;  %v1137_v4 = vpack.c.bf16 %v18_v3, %v17_v2  ;;  %1082 = vmatpush3.bf16.msra.mxu1 %v1084_v0  ;;  %v21_v7 = vld [vmem:[%s1470_s0 + $0x20] sm:$0xff]  ;;  %v22_v8 = vld [vmem:[%s1470_s0 + $0x28] sm:$0xff]  ;;  %v27_v11 = vld [vmem:[%s1470_s0 + $0x50] sm:$0xff]  ;;  %v1165_v13 = vpack.c.bf16 %v20_v6, %v19_v5 }
   0x4   :  { %970 = vmatprep.subr.bf16.mxu0 %v1085_v1  ;;  %1081 = vmatprep.subr.bf16.mxu1 %v1085_v1  ;;  %v25_v9 = vld [vmem:[%s1470_s0 + $0x40] sm:$0xff]  ;;  %v26_v10 = vld [vmem:[%s1470_s0 + $0x48] sm:$0xff]  ;;  %v28_v12 = vld [vmem:[%s1470_s0 + $0x58] sm:$0xff]  ;;  %v1177_v18 = vpack.c.bf16 %v22_v8, %v21_v7 }
   0x5   :  { %972 = vmatprep.mubr.msk.bf16.mxu0 %vm62_vm0, %v1137_v4  ;;  %v1167_v14 = vpack.c.bf16 %v26_v10, %v25_v9  ;;  %v1169_v15 = vpack.c.bf16 %v28_v12, %v27_v11  ;;  %v29_v16 = vld [vmem:[%s1470_s0 + $0x60] sm:$0xff]  ;;  %v30_v17 = vld [vmem:[%s1470_s0 + $0x68] sm:$0xff]  ;;  %v23_v21 = vld [vmem:[%s1470_s0 + $0x30] sm:$0xff] }
   0x6   :  { %v1179_v19 = vpack.c.bf16 %v30_v17, %v29_v16  ;;  %v1086_v20 = vld [vmem:[%s1469_s1 + $0x28] sm:$0xff]   ;;  %v24_v22 = vld [vmem:[%s1470_s0 + $0x38] sm:$0xff]  ;;  %v31_v23 = vld [vmem:[%s1470_s0 + $0x70] sm:$0xff] }
   0x7   :  { %971 = vmatpush3.bf16.msra.mxu0 %v1085_v1  ;;  %1083 = vmatpush3.bf16.msra.mxu1 %v1085_v1  ;;  %v32_v24 = vld [vmem:[%s1470_s0 + $0x78] sm:$0xff]  ;;  %v1206_v25 = vpack.c.bf16 %v24_v22, %v23_v21  ;;  %v1087_v27 = vld [vmem:[%s1469_s1 + $0x20] sm:$0xff]   ;;  %v1089_v29 = vld [vmem:[%s1469_s1 + $0x10] sm:$0xff]  }
   0x8   :  { %980 = vmatprep.mubr.msk.bf16.mxu1 %vm62_vm0, %v1167_v14  ;;  %988 = vmatprep.subr.bf16.mxu1 %v1086_v20  ;;  %v1208_v26 = vpack.c.bf16 %v32_v24, %v31_v23  ;;  %v1088_v28 = vld [vmem:[%s1469_s1 + $0x18] sm:$0xff]   ;;  %v1090_v30 = vld [vmem:[%s1469_s1 + $0x48] sm:$0xff]   ;;  %v852_v35 = vld [vmem:[%s1471_s2] ss:$0 sm:$0xff] }
   0x9   :  { %1012 = vmatprep.subr.bf16.mxu0 %v1090_v30 }
   0xa   :  { %973 = vmatmul.mubr.msk.bf16.vlgmr.msra.gmra.mxu0 %vm62_vm0, %v1165_v13  ;;  %981 = vmatmul.mubr.msk.bf16.vlgmr.msra.gmra.mxu1 %vm62_vm0, %v1169_v15 }
   0xb   :  { %976 = vmatprep.mubr.msk.bf16.mxu0 %vm62_vm0, %v1177_v18  ;;  %984 = vmatprep.mubr.msk.bf16.mxu1 %vm62_vm0, %v1179_v19 }
   0xc   :  { %989 = vmatpush3.bf16.msra.mxu1 %v1086_v20  ;;  %1013 = vmatpush3.bf16.msra.mxu0 %v1090_v30 }
   0xd   :  { %990 = vmatprep.subr.bf16.mxu1 %v1087_v27 }
  0x10   :  { %991 = vmatpush3.bf16.msra.mxu1 %v1087_v27 }
  0x11   :  { %992 = vmatprep.subr.bf16.mxu1 %v1088_v28 }
  0x12   :  { %977 = vmatmul.mubr.msk.bf16.gmra.mxu0 %vm62_vm0, %v1206_v25  ;;  %985 = vmatmul.mubr.msk.bf16.gmra.mxu1 %vm62_vm0, %v1208_v26 }
  0x14   :  { %993 = vmatpush3.bf16.msra.mxu1 %v1088_v28 }
  0x15   :  { %994 = vmatprep.subr.bf16.mxu1 %v1089_v29 }
  0x18   :  { %995 = vmatpush3.bf16.msra.mxu1 %v1089_v29 }
  0xca   :  { %v974_v31 = vpop.f32.mrf.mxu0  ;;  %v982_v32 = vpop.f32.mrf.mxu1 }
  0xcb   :  { %v130_v40 = vadd.f32 %v974_v31, %v852_v35  ;;  %v162_v11 = vadd.f32 %v982_v32, %v852_v35  ;;  %v1091_v32 = vld [vmem:[%s1469_s1 + $0x40] sm:$0xff]  }
  0xcc   :  { %v121_v33 = vpop.f32.mrf.mxu0  ;;  %v153_v34 = vpop.f32.mrf.mxu1  ;;  %1014 = vmatprep.subr.bf16.mxu0 %v1091_v32 }
  0xcd   :  { %v122_v38 = vadd.f32 %v852_v35, %v121_v33  ;;  %v186_v49 = vmax.f32 %v130_v40, 0.0  ;;  %v154_v53 = vadd.f32 %v852_v35, %v153_v34  ;;  %v194_v21 = vmax.f32 %v162_v11, 0.0  ;;  %1015 = vmatpush3.bf16.msra.mxu0 %v1091_v32  ;;  %v1092_v33 = vld [vmem:[%s1469_s1 + $0x38] sm:$0xff]   ;;  %v1093_v34 = vld [vmem:[%s1469_s1 + $0x30] sm:$0xff]  }
  0xce   :  { %v975_v36 = vpop.f32.mrf.mxu0  ;;  %v983_v37 = vpop.f32.mrf.mxu1  ;;  %1016 = vmatprep.subr.bf16.mxu0 %v1092_v33 }
  0xcf   :  { %v133_v39 = vadd.f32 %v975_v36, %v852_v35  ;;  %v184_v47 = vmax.f32 %v122_v38, 0.0  ;;  %v192_v62 = vmax.f32 %v154_v53, 0.0  ;;  %v165_v16 = vadd.f32 %v983_v37, %v852_v35  ;;  %v1097_v36 = vld [vmem:[%s1469_s1 + $0x70] sm:$0xff]  }
  0xd0   :  { %v124_v41 = vpop.f32.mrf.mxu0  ;;  %v156_v42 = vpop.f32.mrf.mxu1 }
  0xd1   :  { %v125_v43 = vadd.f32 %v852_v35, %v124_v41  ;;  %v187_v44 = vmax.f32 %v133_v39, 0.0  ;;  %v157_v54 = vadd.f32 %v852_v35, %v156_v42  ;;  %v195_v22 = vmax.f32 %v165_v16, 0.0  ;;  %1017 = vmatpush3.bf16.msra.mxu0 %v1092_v33 }
  0xd2   :  { %v978_v45 = vpop.f32.mrf.mxu0  ;;  %v986_v46 = vpop.f32.mrf.mxu1  ;;  %1018 = vmatprep.subr.bf16.mxu0 %v1093_v34 }
  0xd3   :  { %v185_v48 = vmax.f32 %v125_v43, 0.0  ;;  %v201_v55 = vpack.c.bf16 %v187_v44, %v186_v49  ;;  %v146_v60 = vadd.f32 %v978_v45, %v852_v35  ;;  %v193_v0 = vmax.f32 %v157_v54, 0.0 }
  0xd4   :  { %v137_v50 = vpop.f32.mrf.mxu0  ;;  %v169_v51 = vpop.f32.mrf.mxu1  ;;  %v205_v24 = vpack.c.bf16 %v195_v22, %v194_v21  ;;  %v178_v27 = vadd.f32 %v986_v46, %v852_v35 }
  0xd5   :  { %v200_v52 = vpack.c.bf16 %v185_v48, %v184_v47  ;;  %v138_v58 = vadd.f32 %v852_v35, %v137_v50  ;;  %v190_v6 = vmax.f32 %v146_v60, 0.0  ;;  %v204_v8 = vpack.c.bf16 %v193_v0, %v192_v62  ;;  %1019 = vmatpush3.bf16.msra.mxu0 %v1093_v34  ;;  %v1096_v48 = vld [vmem:[%s1469_s1 + $0x60] sm:$0xff]   ;;  %v1099_v0 = vld [vmem:[%s1469_s1 + $0x50] sm:$0xff]  }
  0xd6   :  { %v979_v56 = vpop.f32.mrf.mxu0  ;;  %v987_v57 = vpop.f32.mrf.mxu1  ;;  %v170_v9 = vadd.f32 %v852_v35, %v169_v51  ;;  %v198_v29 = vmax.f32 %v178_v27, 0.0  ;;  %v876_v34 = vld [vmem:[%s1471_s2 + $0x2] ss:$0 sm:$0xff] }
  0xd7   :  { %v149_v59 = vadd.f32 %v979_v56, %v852_v35  ;;  %996 = vmatprep.mubr.msk.bf16.mxu1 %vm245_vm1, %v200_v52  ;;  %v188_v3 = vmax.f32 %v138_v58, 0.0  ;;  %v181_v28 = vadd.f32 %v987_v57, %v852_v35  ;;  %v1098_v56 = vld [vmem:[%s1469_s1 + $0x58] sm:$0xff]  }
  0xd8   :  { %v140_v61 = vpop.f32.mrf.mxu0  ;;  %997 = vmatmul.mubr.msk.bf16.vlgmr.msra.gmra.mxu1 %vm245_vm1, %v201_v55  ;;  %v172_v2 = vpop.f32.mrf.mxu1  ;;  %v196_v17 = vmax.f32 %v170_v9, 0.0 }
  0xd9   :  { %v141_v63 = vadd.f32 %v852_v35, %v140_v61  ;;  %v191_v1 = vmax.f32 %v149_v59, 0.0  ;;  %v173_v10 = vadd.f32 %v852_v35, %v172_v2  ;;  %v199_v30 = vmax.f32 %v181_v28, 0.0  ;;  %v1095_v35 = vld [vmem:[%s1469_s1 + $0x68] sm:$0xff]  }
  0xda   :  { %1056 = vmatprep.subr.bf16.mxu0 %v1095_v35 }
  0xdb   :  { %v189_v5 = vmax.f32 %v141_v63, 0.0  ;;  %v203_v12 = vpack.c.bf16 %v191_v1, %v190_v6  ;;  %v197_v20 = vmax.f32 %v173_v10, 0.0  ;;  %v207_v31 = vpack.c.bf16 %v199_v30, %v198_v29 }
  0xdd   :  { %v202_v7 = vpack.c.bf16 %v189_v5, %v188_v3  ;;  %v206_v23 = vpack.c.bf16 %v197_v20, %v196_v17 }
  0xdf   :  { %1000 = vmatprep.mubr.msk.bf16.mxu1 %vm245_vm1, %v202_v7 }
  0xe0   :  { %1001 = vmatmul.mubr.msk.bf16.gmra.mxu1 %vm245_vm1, %v203_v12 }
  0xe1   :  { %1004 = vmatprep.mubr.msk.bf16.mxu1 %vm245_vm1, %v204_v8 }
  0xe8   :  { %1005 = vmatmul.mubr.msk.bf16.gmra.mxu1 %vm245_vm1, %v205_v24 }
  0xe9   :  { %1008 = vmatprep.mubr.msk.bf16.mxu1 %vm245_vm1, %v206_v23 }
  0xf0   :  { %1009 = vmatmul.mubr.msk.bf16.gmra.mxu1 %vm245_vm1, %v207_v31 }
  0xf1   :  { %1040 = vmatprep.mubr.msk.bf16.mxu1 %vm62_vm0, %v1137_v4  ;;  %v1094_v4 = vld [vmem:[%s1469_s1 + $0x78] sm:$0xff]  }
  0xf2   :  { %1036 = vmatprep.subr.bf16.mxu1 %v1094_v4 }
  0xf3   :  { %1037 = vmatpush3.bf16.msra.mxu1 %v1094_v4 }
  0xf4   :  { %1038 = vmatprep.subr.bf16.mxu1 %v1097_v36 }
  0xf7   :  { %1039 = vmatpush3.bf16.msra.mxu1 %v1097_v36 }
  0xfa   :  { %1041 = vmatmul.mubr.msk.bf16.vlgmr.msra.gmra.mxu1 %vm62_vm0, %v1165_v13 }
  0xfb   :  { %1044 = vmatprep.mubr.msk.bf16.mxu1 %vm62_vm0, %v1177_v18  ;;  %v1274_v18 = vld [vmem:[%s1471_s2 + $0x1] ss:$0 sm:$0xff] }
 0x102   :  { %1045 = vmatmul.mubr.msk.bf16.gmra.mxu1 %vm62_vm0, %v1206_v25 }
 0x103   :  { %1048 = vmatprep.mubr.msk.bf16.mxu1 %vm62_vm0, %v1167_v14 }
 0x10a   :  { %1049 = vmatmul.mubr.msk.bf16.gmra.mxu1 %vm62_vm0, %v1169_v15 }
 0x10b   :  { %1052 = vmatprep.mubr.msk.bf16.mxu1 %vm62_vm0, %v1179_v19 }
 0x112   :  { %1053 = vmatmul.mubr.msk.bf16.gmra.mxu1 %vm62_vm0, %v1208_v26 }
 0x198   :  { %v998_v37 = vpop.f32.mrf.mxu1 }
 0x199   :  { %v313_v15 = vadd.f32 %v998_v37, %v1274_v18 }
 0x19a   :  { %v304_v13 = vpop.f32.mrf.mxu1 }
 0x19b   :  { %v305_v38 = vadd.f32 %v1274_v18, %v304_v13  ;;  %v369_v43 = vmax.f32 %v313_v15, 0.0 }
 0x19c   :  { %v999_v25 = vpop.f32.mrf.mxu1 }
 0x19d   :  { %v316_v14 = vadd.f32 %v999_v25, %v1274_v18  ;;  %v367_v26 = vmax.f32 %v305_v38, 0.0 }
 0x19e   :  { %v307_v39 = vpop.f32.mrf.mxu1 }
 0x19f   :  { %v308_v19 = vadd.f32 %v1274_v18, %v307_v39  ;;  %v370_v40 = vmax.f32 %v316_v14, 0.0 }
 0x1a0   :  { %v1002_v41 = vpop.f32.mrf.mxu1 }
 0x1a1   :  { %v368_v42 = vmax.f32 %v308_v19, 0.0  ;;  %v384_v46 = vpack.c.bf16 %v370_v40, %v369_v43  ;;  %v329_v51 = vadd.f32 %v1002_v41, %v1274_v18 }
 0x1a2   :  { %v320_v44 = vpop.f32.mrf.mxu1 }
 0x1a3   :  { %v383_v45 = vpack.c.bf16 %v368_v42, %v367_v26  ;;  %v321_v49 = vadd.f32 %v1274_v18, %v320_v44  ;;  %v373_v59 = vmax.f32 %v329_v51, 0.0 }
 0x1a4   :  { %v1003_v47 = vpop.f32.mrf.mxu1 }
 0x1a5   :  { %v332_v50 = vadd.f32 %v1003_v47, %v1274_v18  ;;  %1020 = vmatprep.mubr.msk.bf16.mxu0 %vm245_vm1, %v383_v45  ;;  %v371_v57 = vmax.f32 %v321_v49, 0.0 }
 0x1a6   :  { %v323_v52 = vpop.f32.mrf.mxu1  ;;  %1021 = vmatmul.mubr.msk.bf16.vlgmr.msra.gmra.mxu0 %vm245_vm1, %v384_v46 }
 0x1a7   :  { %v324_v53 = vadd.f32 %v1274_v18, %v323_v52  ;;  %1057 = vmatpush3.bf16.msra.mxu0 %v1095_v35  ;;  %v374_v54 = vmax.f32 %v332_v50, 0.0 }
 0x1a8   :  { %v1006_v55 = vpop.f32.mrf.mxu1  ;;  %1058 = vmatprep.subr.bf16.mxu0 %v1096_v48 }
 0x1a9   :  { %v372_v58 = vmax.f32 %v324_v53, 0.0  ;;  %v386_v62 = vpack.c.bf16 %v374_v54, %v373_v59  ;;  %v345_v3 = vadd.f32 %v1006_v55, %v1274_v18 }
 0x1aa   :  { %v336_v60 = vpop.f32.mrf.mxu1 }
 0x1ab   :  { %v385_v61 = vpack.c.bf16 %v372_v58, %v371_v57  ;;  %1059 = vmatpush3.bf16.msra.mxu0 %v1096_v48  ;;  %v337_v1 = vadd.f32 %v1274_v18, %v336_v60  ;;  %v377_v11 = vmax.f32 %v345_v3, 0.0 }
 0x1ac   :  { %v1007_v63 = vpop.f32.mrf.mxu1  ;;  %1060 = vmatprep.subr.bf16.mxu0 %v1098_v56 }
 0x1ad   :  { %v348_v2 = vadd.f32 %v1007_v63, %v1274_v18  ;;  %1024 = vmatprep.mubr.msk.bf16.mxu0 %vm245_vm1, %v385_v61  ;;  %v375_v9 = vmax.f32 %v337_v1, 0.0 }
 0x1ae   :  { %v339_v5 = vpop.f32.mrf.mxu1  ;;  %1025 = vmatmul.mubr.msk.bf16.gmra.mxu0 %vm245_vm1, %v386_v62 }
 0x1af   :  { %v340_v6 = vadd.f32 %v1274_v18, %v339_v5  ;;  %1061 = vmatpush3.bf16.msra.mxu0 %v1098_v56  ;;  %v378_v7 = vmax.f32 %v348_v2, 0.0  ;;  %v1383_v5 = vld [vmem:[%s1471_s2 + $0x3] ss:$0 sm:$0xff] }
 0x1b0   :  { %v1010_v8 = vpop.f32.mrf.mxu1  ;;  %1062 = vmatprep.subr.bf16.mxu0 %v1099_v0 }
 0x1b1   :  { %v376_v10 = vmax.f32 %v340_v6, 0.0  ;;  %v388_v17 = vpack.c.bf16 %v378_v7, %v377_v11  ;;  %v361_v23 = vadd.f32 %v1010_v8, %v1274_v18 }
 0x1b2   :  { %v352_v12 = vpop.f32.mrf.mxu1 }
 0x1b3   :  { %v387_v16 = vpack.c.bf16 %v376_v10, %v375_v9  ;;  %1063 = vmatpush3.bf16.msra.mxu0 %v1099_v0  ;;  %v353_v21 = vadd.f32 %v1274_v18, %v352_v12  ;;  %v381_v31 = vmax.f32 %v361_v23, 0.0 }
 0x1b4   :  { %v1011_v20 = vpop.f32.mrf.mxu1 }
 0x1b5   :  { %v364_v22 = vadd.f32 %v1011_v20, %v1274_v18  ;;  %1028 = vmatprep.mubr.msk.bf16.mxu0 %vm245_vm1, %v387_v16  ;;  %v379_v29 = vmax.f32 %v353_v21, 0.0 }
 0x1b6   :  { %v355_v24 = vpop.f32.mrf.mxu1  ;;  %1029 = vmatmul.mubr.msk.bf16.gmra.mxu0 %vm245_vm1, %v388_v17 }
 0x1b7   :  { %v356_v27 = vadd.f32 %v1274_v18, %v355_v24  ;;  %v382_v28 = vmax.f32 %v364_v22, 0.0 }
 0x1b9   :  { %v380_v30 = vmax.f32 %v356_v27, 0.0  ;;  %v390_v33 = vpack.c.bf16 %v382_v28, %v381_v31 }
 0x1ba   :  { %v1042_v37 = vpop.f32.mrf.mxu1 }
 0x1bb   :  { %v389_v32 = vpack.c.bf16 %v380_v30, %v379_v29 }
 0x1bc   :  { %v623_v14 = vpop.f32.mrf.mxu1 }
 0x1bd   :  { %1032 = vmatprep.mubr.msk.bf16.mxu0 %vm245_vm1, %v389_v32 }
 0x1be   :  { %1033 = vmatmul.mubr.msk.bf16.gmra.mxu0 %vm245_vm1, %v390_v33  ;;  %v1043_v41 = vpop.f32.mrf.mxu1 }
 0x1bf   :  { %1064 = vmatprep.mubr.msk.bf16.mxu0 %vm245_vm1, %v383_v45 }
 0x1c0   :  { %v626_v45 = vpop.f32.mrf.mxu1 }
 0x1c2   :  { %v1046_v50 = vpop.f32.mrf.mxu1 }
 0x1c4   :  { %v639_v55 = vpop.f32.mrf.mxu1 }
 0x1c6   :  { %1065 = vmatmul.mubr.msk.bf16.vlgmr.msra.gmra.mxu0 %vm245_vm1, %v384_v46  ;;  %v1047_v60 = vpop.f32.mrf.mxu1 }
 0x1c7   :  { %1068 = vmatprep.mubr.msk.bf16.mxu0 %vm245_vm1, %v385_v61 }
 0x1c8   :  { %v642_v1 = vpop.f32.mrf.mxu1 }
 0x1ca   :  { %v1050_v8 = vpop.f32.mrf.mxu1 }
 0x1cc   :  { %v655_v20 = vpop.f32.mrf.mxu1 }
 0x1ce   :  { %1069 = vmatmul.mubr.msk.bf16.gmra.mxu0 %vm245_vm1, %v386_v62  ;;  %v1051_v29 = vpop.f32.mrf.mxu1 }
 0x1cf   :  { %1072 = vmatprep.mubr.msk.bf16.mxu0 %vm245_vm1, %v387_v16 }
 0x1d6   :  { %1073 = vmatmul.mubr.msk.bf16.gmra.mxu0 %vm245_vm1, %v388_v17 }
 0x1d7   :  { %1076 = vmatprep.mubr.msk.bf16.mxu0 %vm245_vm1, %v389_v32 }
 0x1de   :  { %1077 = vmatmul.mubr.msk.bf16.gmra.mxu0 %vm245_vm1, %v390_v33 }
 0x266   :  { %v1022_v4 = vpop.f32.mrf.mxu0 }
 0x267   :  { %v495_v35 = vadd.f32 %v1022_v4, %v876_v34 }
 0x268   :  { %v486_v36 = vpop.f32.mrf.mxu0 }
 0x269   :  { %551 = vst.msk [vmem:[%s1472_s3 + $0x10] sm:$0xff] %vm245_vm1, %v495_v35  ;;  %v487_v13 = vadd.f32 %v876_v34, %v486_v36  ;;  %v658_v35 = vpop.f32.mrf.mxu1 }
 0x26a   :  { %v1023_v18 = vpop.f32.mrf.mxu0 }
 0x26b   :  { %549 = vst.msk [vmem:[%s1472_s3] sm:$0xff] %vm245_vm1, %v487_v13  ;;  %v498_v25 = vadd.f32 %v1023_v18, %v876_v34 }
 0x26c   :  { %v489_v38 = vpop.f32.mrf.mxu0 }
 0x26d   :  { %552 = vst.msk [vmem:[%s1472_s3 + $0x18] sm:$0xff] %vm245_vm1, %v498_v25  ;;  %v490_v15 = vadd.f32 %v876_v34, %v489_v38  ;;  %v1054_v38 = vpop.f32.mrf.mxu1 }
 0x26e   :  { %v1026_v39 = vpop.f32.mrf.mxu0 }
 0x26f   :  { %550 = vst.msk [vmem:[%s1472_s3 + $0x8] sm:$0xff] %vm245_vm1, %v490_v15  ;;  %v511_v19 = vadd.f32 %v1026_v39, %v876_v34 }
 0x270   :  { %v502_v40 = vpop.f32.mrf.mxu0 }
 0x271   :  { %555 = vst.msk [vmem:[%s1472_s3 + $0x30] sm:$0xff] %vm245_vm1, %v511_v19  ;;  %v503_v26 = vadd.f32 %v876_v34, %v502_v40 }
 0x272   :  { %v1027_v42 = vpop.f32.mrf.mxu0 }
 0x273   :  { %553 = vst.msk [vmem:[%s1472_s3 + $0x20] sm:$0xff] %vm245_vm1, %v503_v26  ;;  %v514_v43 = vadd.f32 %v1027_v42, %v876_v34  ;;  %v671_v26 = vpop.f32.mrf.mxu1 }
 0x274   :  { %v505_v44 = vpop.f32.mrf.mxu0 }
 0x275   :  { %556 = vst.msk [vmem:[%s1472_s3 + $0x38] sm:$0xff] %vm245_vm1, %v514_v43  ;;  %v506_v46 = vadd.f32 %v876_v34, %v505_v44 }
 0x276   :  { %v1030_v47 = vpop.f32.mrf.mxu0 }
 0x277   :  { %554 = vst.msk [vmem:[%s1472_s3 + $0x28] sm:$0xff] %vm245_vm1, %v506_v46  ;;  %v527_v48 = vadd.f32 %v1030_v47, %v876_v34 }
 0x278   :  { %v518_v49 = vpop.f32.mrf.mxu0 }
 0x279   :  { %559 = vst.msk [vmem:[%s1472_s3 + $0x50] sm:$0xff] %vm245_vm1, %v527_v48  ;;  %v519_v51 = vadd.f32 %v876_v34, %v518_v49  ;;  %v1055_v48 = vpop.f32.mrf.mxu1 }
 0x27a   :  { %v1031_v52 = vpop.f32.mrf.mxu0 }
 0x27b   :  { %557 = vst.msk [vmem:[%s1472_s3 + $0x40] sm:$0xff] %vm245_vm1, %v519_v51  ;;  %v530_v53 = vadd.f32 %v1031_v52, %v876_v34 }
 0x27c   :  { %v521_v54 = vpop.f32.mrf.mxu0 }
 0x27d   :  { %560 = vst.msk [vmem:[%s1472_s3 + $0x58] sm:$0xff] %vm245_vm1, %v530_v53  ;;  %v522_v56 = vadd.f32 %v876_v34, %v521_v54 }
 0x27e   :  { %v1034_v57 = vpop.f32.mrf.mxu0 }
 0x27f   :  { %558 = vst.msk [vmem:[%s1472_s3 + $0x48] sm:$0xff] %vm245_vm1, %v522_v56  ;;  %v543_v58 = vadd.f32 %v1034_v57, %v876_v34 }
 0x280   :  { %v534_v59 = vpop.f32.mrf.mxu0 }
 0x281   :  { %563 = vst.msk [vmem:[%s1472_s3 + $0x70] sm:$0xff] %vm245_vm1, %v543_v58  ;;  %v535_v61 = vadd.f32 %v876_v34, %v534_v59 }
 0x282   :  { %v1035_v62 = vpop.f32.mrf.mxu0 }
 0x283   :  { %561 = vst.msk [vmem:[%s1472_s3 + $0x60] sm:$0xff] %vm245_vm1, %v535_v61  ;;  %v546_v63 = vadd.f32 %v1035_v62, %v876_v34 }
 0x284   :  { %v537_v0 = vpop.f32.mrf.mxu0 }
 0x285   :  { %564 = vst.msk [vmem:[%s1472_s3 + $0x78] sm:$0xff] %vm245_vm1, %v546_v63  ;;  %v538_v2 = vadd.f32 %v876_v34, %v537_v0 }
 0x286   :  { %v1066_v3 = vpop.f32.mrf.mxu0 }
 0x287   :  { %562 = vst.msk [vmem:[%s1472_s3 + $0x68] sm:$0xff] %vm245_vm1, %v538_v2  ;;  %v753_v6 = vadd.f32 %v1066_v3, %v1042_v37 }
 0x288   :  { %v744_v7 = vpop.f32.mrf.mxu0 }
 0x289   :  { %v814_v9 = vadd.f32 %v1383_v5, %v753_v6  ;;  %v745_v10 = vadd.f32 %v744_v7, %v623_v14 }
 0x28a   :  { %v1067_v11 = vpop.f32.mrf.mxu0 }
 0x28b   :  { %830 = vst.msk [vmem:[%s1473_s4 + $0x10] sm:$0xff] %vm245_vm1, %v814_v9  ;;  %v812_v12 = vadd.f32 %v1383_v5, %v745_v10  ;;  %v756_v16 = vadd.f32 %v1067_v11, %v1043_v41 }
 0x28c   :  { %v747_v17 = vpop.f32.mrf.mxu0 }
 0x28d   :  { %828 = vst.msk [vmem:[%s1473_s4] sm:$0xff] %vm245_vm1, %v812_v12  ;;  %v815_v21 = vadd.f32 %v1383_v5, %v756_v16  ;;  %v748_v22 = vadd.f32 %v747_v17, %v626_v45 }
 0x28e   :  { %v1070_v23 = vpop.f32.mrf.mxu0 }
 0x28f   :  { %831 = vst.msk [vmem:[%s1473_s4 + $0x18] sm:$0xff] %vm245_vm1, %v815_v21  ;;  %v813_v24 = vadd.f32 %v1383_v5, %v748_v22  ;;  %v769_v27 = vadd.f32 %v1070_v23, %v1046_v50 }
 0x290   :  { %v760_v28 = vpop.f32.mrf.mxu0 }
 0x291   :  { %829 = vst.msk [vmem:[%s1473_s4 + $0x8] sm:$0xff] %vm245_vm1, %v813_v24  ;;  %v818_v30 = vadd.f32 %v1383_v5, %v769_v27  ;;  %v761_v31 = vadd.f32 %v760_v28, %v639_v55  ;;  %v674_v55 = vpop.f32.mrf.mxu1 }
 0x292   :  { %v1071_v32 = vpop.f32.mrf.mxu0 }
 0x293   :  { %834 = vst.msk [vmem:[%s1473_s4 + $0x30] sm:$0xff] %vm245_vm1, %v818_v30  ;;  %v816_v33 = vadd.f32 %v1383_v5, %v761_v31  ;;  %v772_v34 = vadd.f32 %v1071_v32, %v1047_v60 }
 0x294   :  { %v763_v4 = vpop.f32.mrf.mxu0 }
 0x295   :  { %832 = vst.msk [vmem:[%s1473_s4 + $0x20] sm:$0xff] %vm245_vm1, %v816_v33  ;;  %v819_v36 = vadd.f32 %v1383_v5, %v772_v34  ;;  %v764_v37 = vadd.f32 %v763_v4, %v642_v1 }
 0x296   :  { %v1074_v13 = vpop.f32.mrf.mxu0 }
 0x297   :  { %835 = vst.msk [vmem:[%s1473_s4 + $0x38] sm:$0xff] %vm245_vm1, %v819_v36  ;;  %v817_v18 = vadd.f32 %v1383_v5, %v764_v37  ;;  %v785_v25 = vadd.f32 %v1074_v13, %v1050_v8 }
 0x298   :  { %v776_v14 = vpop.f32.mrf.mxu0 }
 0x299   :  { %833 = vst.msk [vmem:[%s1473_s4 + $0x28] sm:$0xff] %vm245_vm1, %v817_v18  ;;  %v822_v15 = vadd.f32 %v1383_v5, %v785_v25  ;;  %v777_v39 = vadd.f32 %v776_v14, %v655_v20 }
 0x29a   :  { %v1075_v19 = vpop.f32.mrf.mxu0 }
 0x29b   :  { %838 = vst.msk [vmem:[%s1473_s4 + $0x50] sm:$0xff] %vm245_vm1, %v822_v15  ;;  %v820_v40 = vadd.f32 %v1383_v5, %v777_v39  ;;  %v788_v41 = vadd.f32 %v1075_v19, %v1051_v29 }
 0x29c   :  { %v779_v42 = vpop.f32.mrf.mxu0 }
 0x29d   :  { %836 = vst.msk [vmem:[%s1473_s4 + $0x40] sm:$0xff] %vm245_vm1, %v820_v40  ;;  %v823_v43 = vadd.f32 %v1383_v5, %v788_v41  ;;  %v780_v44 = vadd.f32 %v779_v42, %v658_v35 }
 0x29e   :  { %v1078_v45 = vpop.f32.mrf.mxu0 }
 0x29f   :  { %839 = vst.msk [vmem:[%s1473_s4 + $0x58] sm:$0xff] %vm245_vm1, %v823_v43  ;;  %v821_v46 = vadd.f32 %v1383_v5, %v780_v44  ;;  %v801_v47 = vadd.f32 %v1078_v45, %v1054_v38 }
 0x2a0   :  { %v792_v49 = vpop.f32.mrf.mxu0 }
 0x2a1   :  { %837 = vst.msk [vmem:[%s1473_s4 + $0x48] sm:$0xff] %vm245_vm1, %v821_v46  ;;  %v826_v50 = vadd.f32 %v1383_v5, %v801_v47  ;;  %v793_v51 = vadd.f32 %v792_v49, %v671_v26 }
 0x2a2   :  { %v1079_v52 = vpop.f32.mrf.mxu0 }
 0x2a3   :  { %842 = vst.msk [vmem:[%s1473_s4 + $0x70] sm:$0xff] %vm245_vm1, %v826_v50  ;;  %v824_v53 = vadd.f32 %v1383_v5, %v793_v51  ;;  %v804_v54 = vadd.f32 %v1079_v52, %v1055_v48 }
 0x2a4   :  { %v795_v56 = vpop.f32.mrf.mxu0 }
 0x2a5   :  { %840 = vst.msk [vmem:[%s1473_s4 + $0x60] sm:$0xff] %vm245_vm1, %v824_v53  ;;  %v827_v57 = vadd.f32 %v1383_v5, %v804_v54  ;;  %v796_v58 = vadd.f32 %v795_v56, %v674_v55 }
 0x2a7   :  { %843 = vst.msk [vmem:[%s1473_s4 + $0x78] sm:$0xff] %vm245_vm1, %v827_v57  ;;  %v825_v59 = vadd.f32 %v1383_v5, %v796_v58 }
 0x2a9   :  { %841 = vst.msk [vmem:[%s1473_s4 + $0x68] sm:$0xff] %vm245_vm1, %v825_v59 }

// kernel: _lambda_.3
= control target key start
LH: loop header
LB: loop body
LE: loop exit
PB: predicated region body
PF: predicated region fallthrough
CT: control target
= control target key end

     0   :  { %s1547_s27 = smov 0   ;;  %s1767_s0 = inlined_call_operand.vmem [shape: f32[32,32], index: 0, kind: input, shape index: {}]   ;;  %s1768_s1 = inlined_call_operand.vmem [shape: f32[32,16], index: 1, kind: input, shape index: {}]   ;;  %s1769_s2 = inlined_call_operand.vmem [shape: bf16[64,128], index: 2, kind: input, shape index: {}]   ;;  %s1770_s3 = inlined_call_operand.vmem [shape: bf16[128,64], index: 3, kind: input, shape index: {}]   ;;  %s1771_s4 = inlined_call_operand.vmem [shape: f32[1,128], index: 4, kind: input, shape index: {}]   ;;  %s1772_s5 = inlined_call_operand.vmem [shape: bf16[256,64], index: 5, kind: input, shape index: {}]   ;;  %s1773_s6 = inlined_call_operand.vmem [shape: f32[9,64], index: 6, kind: input, shape index: {}]   ;;  %s1774_s7 = inlined_call_operand.vmem [shape: f32[32,16], index: 7, kind: output, shape index: {0}]   ;;  %s1775_s8 = inlined_call_operand.vmem [shape: f32[32,128], index: 8, kind: output, shape index: {1}]  }
   0x1 LB: > { %s1236_s28 = sadd.s32 4294967295, %s1494_s27   ;;  %p1240_p0 = scmp.ge.s32.totalorder %s1494_s27, 1  ;;  %s1494_s27 = sphi %s1547_s27, %s19_s27  }
   0x2   : > { %p277_p1 = scmp.lt.s32.totalorder %s1494_s27, 3 }
   0x4   : > { %p278_p2 = pnand %p1240_p0, %p277_p1 }
   0x5   : > { %s1241_s11 = sshll.u32 (!%p278_p2), %s1236_s28, 1  ;;  %s1498_s10 = smov (!%p278_p2), 96  }
   0x6   : > { %281 = sbr.rel (%p278_p2) target bundleno = 2687 (0xa7f), region = 48  ;;  %p322_p3 = scmp.lt.s32.totalorder (!%p278_p2), %s1241_s11, 3 }
   0x7   : > { %s1500_s18 = smov (!%p278_p2), 112   ;;  %s1501_s19 = smov (!%p278_p2), 16  }
   0xb   : > { %v1436_v0 = vld [vmem:[%s1772_s5 + $0x8] sm:$0xff]   ;;  %v1496_v1 = vmov 0.0   ;;  %v1437_v2 = vld [vmem:[%s1772_s5] sm:$0xff]   ;;  %vm1497_vm0 = vmmov 0   ;;  %s1777_s11 = smov (!%p322_p3, %s1241_s11), 3  ;;  %vm372_vm1 = vcmask 261120  }
   0xc   : > { %1334 = vmatprep.subr.bf16.mxu0 %v1496_v1  ;;  %1342 = vmatprep.subr.bf16.mxu1 %v1496_v1  ;;  %v1438_v3 = vld [vmem:[%s1772_s5 + $0x28] sm:$0xff]   ;;  %s1572_s14 = sshll.u32 %s1777_s11, 3  ;;  %v1439_v7 = vld [vmem:[%s1772_s5 + $0x20] sm:$0xff]   ;;  %v1440_v8 = vld [vmem:[%s1772_s5 + $0x18] sm:$0xff]   ;;  %vm457_vm2 = vcmask 523264   ;;  %vm815_vm3 = vcmask 130048  }
   0xd   : > { %1335 = vmatpush3.bf16.msra.mxu0 %v1436_v0  ;;  %1338 = vmatprep.mubr.msk.bf16.mxu0 %vm1497_vm0, %v1496_v1  ;;  %s325_s17 = scalar_lea.vmem %s1767_s0, %s1572_s14  ;;  %v1441_v9 = vld [vmem:[%s1772_s5 + $0x10] sm:$0xff]   ;;  %v1442_v10 = vld [vmem:[%s1772_s5 + $0x48] sm:$0xff]   ;;  %v1249_v11 = vld [vmem:[%s1773_s6] ss:$0 sm:$0xff]  ;;  %s331_s11 = scalar_lea.vmem %s1768_s1, %s1572_s14 }
   0xe   : > { %1336 = vmatprep.subr.bf16.mxu0 %v1496_v1  ;;  %1350 = vmatprep.mubr.msk.bf16.mxu1 %vm1497_vm0, %v1496_v1  ;;  %v346_v4 = vld [vmem:[%s325_s17] sm:$0xff]  ;;  %v347_v5 = vld [vmem:[%s325_s17 + $0x8] sm:$0xff]  ;;  %v1444_v22 = vld [vmem:[%s1772_s5 + $0x38] sm:$0xff]   ;;  %s343_s13 = scalar_lea.vmem %s1775_s8, %s1572_s14  ;;  %s1499_s17 = smov 32  }
   0xf   : > { %1343 = vmatpush3.bf16.msra.mxu1 %v1438_v3  ;;  %v350_v6 = vpack.c.bf16 %v347_v5, %v346_v4  ;;  %v1443_v21 = vld [vmem:[%s1772_s5 + $0x40] sm:$0xff]   ;;  %v1445_v23 = vld [vmem:[%s1772_s5 + $0x30] sm:$0xff]   ;;  %v1446_v24 = vld [vmem:[%s1769_s2 + $0x18] sm:$0xff]   ;;  %s337_s20 = scalar_lea.vmem %s1774_s7, %s1572_s14 }
  0x10   : > { %1344 = vmatprep.subr.bf16.mxu1 %v1496_v1  ;;  %v1447_v25 = vld [vmem:[%s1769_s2 + $0x10] sm:$0xff]   ;;  %v1253_v26 = vld [vmem:[%s1773_s6 + $0x1] ss:$0 sm:$0xff]  ;;  %v1448_v36 = vld [vmem:[%s1769_s2 + $0x8] sm:$0xff]  }
  0x11   : > { %1337 = vmatpush3.bf16.msra.mxu0 %v1437_v2  ;;  %v1449_v37 = vld [vmem:[%s1769_s2] sm:$0xff]   ;;  %v1450_v53 = vld [vmem:[%s1772_s5 + $0x50] sm:$0xff]   ;;  %v1451_v54 = vld [vmem:[%s1770_s3 + $0x38] sm:$0xff]  }
  0x12   : > { %1354 = vmatprep.subr.bf16.mxu0 %v1496_v1  ;;  %v1259_v39 = vld [vmem:[%s1773_s6 + $0x2] ss:$0 sm:$0xff]  ;;  %v1265_v46 = vld [vmem:[%s1771_s4] ss:$0 sm:$0xff]  ;;  %v1658_v56 = vld [vmem:[%s331_s11 + $0x8] sm:$0xff] }
  0x13   : > { %1345 = vmatpush3.bf16.msra.mxu1 %v1439_v7  ;;  %v1656_v55 = vld [vmem:[%s331_s11] sm:$0xff]  ;;  %v1452_v58 = vld [vmem:[%s1770_s3 + $0x30] sm:$0xff]   ;;  %v1453_v59 = vld [vmem:[%s1770_s3 + $0x28] sm:$0xff]  }
  0x14   : > { %1339 = vmatmul.mubr.msk.bf16.vlgmr.msra.gmra.mxu0 %vm372_vm1, %v350_v6  ;;  %1346 = vmatprep.subr.bf16.mxu1 %v1496_v1  ;;  %v801_v57 = vpack.c.bf16 %v1658_v56, %v1656_v55  ;;  %v1454_v5 = vld [vmem:[%s1770_s3 + $0x20] sm:$0xff]   ;;  %v1455_v6 = vld [vmem:[%s1770_s3 + $0x18] sm:$0xff]   ;;  %v1456_v7 = vld [vmem:[%s1770_s3 + $0x10] sm:$0xff]  }
  0x15   : > { %1362 = vmatprep.mubr.msk.bf16.mxu0 %vm1497_vm0, %v1496_v1  ;;  %1355 = vmatpush3.bf16.msra.mxu0 %v1442_v10  ;;  %v1280_v10 = vld [vmem:[%s1773_s6 + $0x4] ss:$0 sm:$0xff] }
  0x16   : > { %1356 = vmatprep.subr.bf16.mxu0 %v1496_v1 }
  0x17   : > { %1347 = vmatpush3.bf16.msra.mxu1 %v1440_v8  ;;  %v1457_v8 = vld [vmem:[%s1770_s3 + $0x8] sm:$0xff]  }
  0x18   : > { %1348 = vmatprep.subr.bf16.mxu1 %v1496_v1 }
  0x19   : > { %1357 = vmatpush3.bf16.msra.mxu0 %v1443_v21 }
  0x1a   : > { %1358 = vmatprep.subr.bf16.mxu0 %v1496_v1 }
  0x1b   : > { %1349 = vmatpush3.bf16.msra.mxu1 %v1441_v9  ;;  %v1458_v9 = vld [vmem:[%s1770_s3] sm:$0xff]  }
  0x1c   : > { %1366 = vmatprep.subr.bf16.mxu1 %v1496_v1 }
  0x1d   : > { %1359 = vmatpush3.bf16.msra.mxu0 %v1444_v22 }
  0x1e   : > { %1360 = vmatprep.subr.bf16.mxu0 %v1496_v1 }
  0x21   : > { %1361 = vmatpush3.bf16.msra.mxu0 %v1445_v23 }
  0x22   : > { %1378 = vmatprep.subr.bf16.mxu0 %v1496_v1 }
  0xd4   : > { %v410_v12 = vpop.f32.mrf.mxu0 }
  0xd5   : > { %v411_v14 = vadd.f32 %v1249_v11, %v410_v12 }
  0xd6   : > { %v1340_v13 = vpop.f32.mrf.mxu0 }
  0xd7   : > { %v417_v18 = vmax.f32 %v411_v14, 0.0 }
  0xd8   : > { %v413_v15 = vpop.f32.mrf.mxu0 }
  0xd9   : > { %v414_v16 = vadd.f32 %v1249_v11, %v413_v15 }
  0xda   : > { %v1341_v17 = vpop.f32.mrf.mxu0 }
  0xdb   : > { %v418_v19 = vmax.f32 %v414_v16, 0.0 }
  0xdd   : > { %v419_v20 = vpack.c.bf16 %v418_v19, %v417_v18 }
  0xdf   : > { %1351 = vmatmul.mubr.msk.bf16.vlgmr.msra.gmra.mxu1 %vm457_vm2, %v419_v20 }
  0xe0   : > { %1374 = vmatprep.mubr.msk.bf16.mxu1 %vm1497_vm0, %v1496_v1  ;;  %1367 = vmatpush3.bf16.msra.mxu1 %v1446_v24  ;;  %v1271_v24 = vld [vmem:[%s1773_s6 + $0x3] ss:$0 sm:$0xff] }
  0xe1   : > { %1368 = vmatprep.subr.bf16.mxu1 %v1496_v1 }
  0xe4   : > { %1369 = vmatpush3.bf16.msra.mxu1 %v1447_v25 }
  0xe5   : > { %1370 = vmatprep.subr.bf16.mxu1 %v1496_v1 }
  0xe8   : > { %1371 = vmatpush3.bf16.msra.mxu1 %v1448_v36 }
  0xe9   : > { %1372 = vmatprep.subr.bf16.mxu1 %v1496_v1 }
  0xec   : > { %1373 = vmatpush3.bf16.msra.mxu1 %v1449_v37 }
  0xed   : > { %1398 = vmatprep.subr.bf16.mxu1 %v1496_v1 }
 0x19f   : > { %v495_v27 = vpop.f32.mrf.mxu1 }
 0x1a0   : > { %v496_v29 = vadd.f32 %v1253_v26, %v495_v27 }
 0x1a1   : > { %v1352_v28 = vpop.f32.mrf.mxu1 }
 0x1a2   : > { %v502_v33 = vmax.f32 %v496_v29, 0.0 }
 0x1a3   : > { %v498_v30 = vpop.f32.mrf.mxu1 }
 0x1a4   : > { %v499_v31 = vadd.f32 %v1253_v26, %v498_v30 }
 0x1a5   : > { %v1353_v32 = vpop.f32.mrf.mxu1 }
 0x1a6   : > { %v503_v34 = vmax.f32 %v499_v31, 0.0 }
 0x1a8   : > { %v504_v35 = vpack.c.bf16 %v503_v34, %v502_v33 }
 0x1aa   : > { %1363 = vmatmul.mubr.msk.bf16.vlgmr.msra.gmra.mxu0 %vm457_vm2, %v504_v35 }
 0x1ab   : > { %1394 = vmatprep.mubr.msk.bf16.mxu0 %vm1497_vm0, %v1496_v1  ;;  %1379 = vmatpush3.bf16.msra.mxu0 %v1451_v54 }
 0x1ac   : > { %1380 = vmatprep.subr.bf16.mxu0 %v1496_v1 }
 0x1af   : > { %1381 = vmatpush3.bf16.msra.mxu0 %v1452_v58 }
 0x1b0   : > { %1382 = vmatprep.subr.bf16.mxu0 %v1496_v1 }
 0x1b3   : > { %1383 = vmatpush3.bf16.msra.mxu0 %v1453_v59 }
 0x1b4   : > { %1384 = vmatprep.subr.bf16.mxu0 %v1496_v1 }
 0x1b7   : > { %1385 = vmatpush3.bf16.msra.mxu0 %v1454_v5 }
 0x1b8   : > { %1386 = vmatprep.subr.bf16.mxu0 %v1496_v1 }
 0x1bb   : > { %1387 = vmatpush3.bf16.msra.mxu0 %v1455_v6 }
 0x1bc   : > { %1388 = vmatprep.subr.bf16.mxu0 %v1496_v1 }
 0x1bf   : > { %1389 = vmatpush3.bf16.msra.mxu0 %v1456_v7 }
 0x1c0   : > { %1390 = vmatprep.subr.bf16.mxu0 %v1496_v1 }
 0x1c3   : > { %1391 = vmatpush3.bf16.msra.mxu0 %v1457_v8 }
 0x1c4   : > { %1392 = vmatprep.subr.bf16.mxu0 %v1496_v1 }
 0x1c7   : > { %1393 = vmatpush3.bf16.msra.mxu0 %v1458_v9 }
 0x26a   : > { %v579_v38 = vpop.f32.mrf.mxu0 }
 0x26b   : > { %v580_v42 = vadd.f32 %v1259_v39, %v579_v38 }
 0x26c   : > { %v1364_v40 = vpop.f32.mrf.mxu0 }
 0x26e   : > { %v582_v41 = vpop.f32.mrf.mxu0 }
 0x26f   : > { %v583_v43 = vadd.f32 %v1259_v39, %v582_v41 }
 0x270   : > { %v1365_v44 = vpop.f32.mrf.mxu0 }
 0x271   : > { %v586_v45 = vpack.c.bf16 %v583_v43, %v580_v42 }
 0x273   : > { %1375 = vmatmul.mubr.msk.bf16.vlgmr.msra.gmra.mxu1 %vm457_vm2, %v586_v45 }
 0x274   : > { %1400 = vmatprep.mubr.msk.bf16.mxu1 %vm1497_vm0, %v1496_v1  ;;  %1399 = vmatpush3.bf16.msra.mxu1 %v1450_v53 }
 0x275   : > { %1404 = vmatprep.subr.bf16.mxu1 %v1496_v1 }
 0x27b   : > { %1401 = vmatmul.mubr.msk.bf16.vlgmr.msra.gmra.mxu1 %vm815_vm3, %v801_v57 }
 0x27c   : > { %1406 = vmatprep.mubr.msk.bf16.mxu1 %vm1497_vm0, %v1496_v1 }
 0x333   : > { %v663_v47 = vpop.f32.mrf.mxu1 }
 0x334   : > { %v664_v48 = vadd.f32 %v1265_v46, %v663_v47 }
 0x335   : > { %v1376_v49 = vpop.f32.mrf.mxu1 }
 0x336   : > { %670 = vmax.xlane.f32.xlu0 %v664_v48 }
 0x337   : > { %v666_v50 = vpop.f32.mrf.mxu1 }
 0x338   : > { %v667_v51 = vadd.f32 %v1265_v46, %v666_v50 }
 0x339   : > { %v1377_v52 = vpop.f32.mrf.mxu1 }
 0x33a   : > { %672 = vmax.xlane.f32.xlu0 %v667_v51 }
 0x33b   : > { %v853_v11 = vpop.f32.mrf.mxu1 }
 0x33c   : > { %v854_v12 = vadd.f32 %v1280_v10, %v853_v11 }
 0x33d   : > { %v1402_v13 = vpop.f32.mrf.mxu1 }
 0x33f   : > { %v856_v14 = vpop.f32.mrf.mxu1 }
 0x340   : > { %v857_v15 = vadd.f32 %v1280_v10, %v856_v14 }
 0x341   : > { %v1403_v16 = vpop.f32.mrf.mxu1 }
 0x350   : > { %876 = vrot.lane.b32.xlu0 %v854_v12, %s1498_s10 }
 0x3bf   : > { %v671_v60 = vpop.xlane.xlu0 %670 }
 0x3c0   : > { %v674_v61 = vsub.f32 %v664_v48, %v671_v60 }
 0x3c2   : > { %v676_v62 = vmul.f32 1.442695, %v674_v61 }
 0x3c3   : > { %v673_v63 = vpop.xlane.xlu0 %672 }
 0x3c4   : > { %1464 = vpow2.f32 %v676_v62  ;;  %v675_v0 = vsub.f32 %v667_v51, %v673_v63 }
 0x3c6   : > { %v678_v2 = vmul.f32 1.442695, %v675_v0 }
 0x3c7   : > { %v877_v39 = vpop.permute.xlu0 %876 }
 0x3c8   : > { %1466 = vpow2.f32 %v678_v2 }
 0x3d1   : > { %v1465_v3 = vpop.eup %1464 }
 0x3d2   : > { %680 = vadd.xlane.f32.xlu1 %v1465_v3 }
 0x3d5   : > { %v1467_v4 = vpop.eup %1466 }
 0x3d6   : > { %682 = vadd.xlane.f32.xlu1 %v1467_v4 }
 0x3e7   : > { %878 = vrot.lane.b32.xlu1 %v857_v15, %s1498_s10 }
 0x45b   : > { %v681_v17 = vpop.xlane.xlu1 %680 }
 0x45c   : > { %1468 = vrcp.f32 %v681_v17 }
 0x45f   : > { %v683_v18 = vpop.xlane.xlu1 %682 }
 0x460   : > { %1470 = vrcp.f32 %v683_v18  ;;  %v1286_v18 = vld [vmem:[%s1773_s6 + $0x6] ss:$0 sm:$0xff] }
 0x463   : > { %v879_v43 = vpop.permute.xlu1 %878 }
 0x469   : > { %v1469_v19 = vpop.eup %1468 }
 0x46a   : > { %v686_v20 = vmul.f32 %v1469_v19, %v1465_v3  ;;  %v1285_v19 = vld [vmem:[%s1773_s6 + $0x5] ss:$0 sm:$0xff] }
 0x46c   : > { %688 = vst [vmem:[%s343_s13] sm:$0xff] %v686_v20 }
 0x46d   : > { %v1471_v21 = vpop.eup %1470 }
 0x46e   : > { %v687_v22 = vmul.f32 %v1471_v21, %v1467_v4 }
 0x470   : > { %689 = vst [vmem:[%s343_s13 + $0x8] sm:$0xff] %v687_v22  ;;  %v690_v23 = vpack.c.bf16 %v687_v22, %v686_v20  ;;  %v1459_v20 = vld [vmem:[%s1772_s5 + $0x58] sm:$0xff]  }
 0x471   : > { %1405 = vmatpush3.bf16.msra.mxu1 %v1459_v20 }
 0x472   : > { %1395 = vmatmul.mubr.bf16.vlgmr.msra.gmra.mxu0 %v690_v23  ;;  %1410 = vmatprep.subr.bf16.mxu1 %v1496_v1 }
 0x532   : > { %v794_v25 = vpop.f32.mrf.mxu0 }
 0x533   : > { %v795_v26 = vadd.f32 %v1271_v24, %v794_v25 }
 0x534   : > { %v1396_v27 = vpop.f32.mrf.mxu0 }
 0x535   : > { %v860_v28 = vadd.f32 %v854_v12, %v795_v26 }
 0x536   : > { %v797_v29 = vpop.f32.mrf.mxu0 }
 0x537   : > { %v1283_v30 = vmul.f32 -1.442695, %v860_v28  ;;  %v798_v31 = vadd.f32 %v1271_v24, %v797_v29 }
 0x538   : > { %v1397_v32 = vpop.f32.mrf.mxu0 }
 0x539   : > { %1472 = vpow2.f32 %v1283_v30  ;;  %v861_v33 = vadd.f32 %v857_v15, %v798_v31 }
 0x53b   : > { %v1284_v34 = vmul.f32 -1.442695, %v861_v33 }
 0x53d   : > { %1474 = vpow2.f32 %v1284_v34 }
 0x546   : > { %v1473_v35 = vpop.eup %1472 }
 0x547   : > { %v868_v36 = vadd.f32 1.0, %v1473_v35 }
 0x549   : > { %1476 = vrcp.f32 %v868_v36 }
 0x54a   : > { %v1475_v37 = vpop.eup %1474 }
 0x54b   : > { %v869_v38 = vadd.f32 1.0, %v1475_v37 }
 0x54d   : > { %1478 = vrcp.f32 %v869_v38  ;;  %v1460_v38 = vld [vmem:[%s1772_s5 + $0x78] sm:$0xff]  }
 0x556   : > { %v1477_v40 = vpop.eup %1476 }
 0x557   : > { %v882_v41 = vmul.f32 %v1477_v40, %v877_v39  ;;  %v896_v52 = vsub.f32 1.0, %v1477_v40 }
 0x559   : > { %886 = vrot.lane.b32.xlu1 %v882_v41, %s1499_s17  ;;  %v1462_v41 = vld [vmem:[%s1772_s5 + $0x68] sm:$0xff]  }
 0x55a   : > { %v1479_v42 = vpop.eup %1478 }
 0x55b   : > { %v883_v44 = vmul.f32 %v1479_v42, %v879_v43  ;;  %v897_v60 = vsub.f32 1.0, %v1479_v42  ;;  %v1287_v43 = vld [vmem:[%s1773_s6 + $0x7] ss:$0 sm:$0xff] }
 0x55d   : > { %888 = vrot.lane.b32.xlu1 %v883_v44, %s1499_s17 }
 0x5cb   : > { %v887_v45 = vpop.permute.xlu1 %886 }
 0x5cc   : > { %v892_v46 = vadd.f32 %v887_v45, %v795_v26 }
 0x5ce   : > { %1480 = vtanh.f32 %v892_v46 }
 0x5cf   : > { %v889_v47 = vpop.permute.xlu1 %888 }
 0x5d0   : > { %v893_v48 = vadd.f32 %v889_v47, %v798_v31 }
 0x5d2   : > { %1482 = vtanh.f32 %v893_v48 }
 0x5db   : > { %v1481_v49 = vpop.eup %1480 }
 0x5dc   : > { %900 = vrot.lane.b32.xlu0 %v1481_v49, %s1500_s18 }
 0x5df   : > { %v1483_v50 = vpop.eup %1482 }
 0x5e0   : > { %910 = vrot.lane.b32.xlu0 %v1656_v55, %s1501_s19  ;;  %902 = vrot.lane.b32.xlu1 %v1483_v50, %s1500_s18 }
 0x5e4   : > { %912 = vrot.lane.b32.xlu1 %v1658_v56, %s1501_s19 }
 0x64e   : > { %v901_v51 = vpop.permute.xlu0 %900 }
 0x64f   : > { %v906_v57 = vmul.f32 %v901_v51, %v896_v52 }
 0x652   : > { %v911_v53 = vpop.permute.xlu0 %910  ;;  %v903_v54 = vpop.permute.xlu1 %902 }
 0x653   : > { %v916_v58 = vmul.f32 %v1477_v40, %v911_v53  ;;  %v907_v62 = vmul.f32 %v903_v54, %v897_v60  ;;  %v1461_v40 = vld [vmem:[%s1772_s5 + $0x70] sm:$0xff]  }
 0x655   : > { %v918_v59 = vadd.f32 %v916_v58, %v906_v57 }
 0x656   : > { %v913_v61 = vpop.permute.xlu1 %912 }
 0x657   : > { %v917_v63 = vmul.f32 %v1479_v42, %v913_v61  ;;  %922 = vrot.lane.b32.xlu0 %v918_v59, %s1500_s18  ;;  %v1463_v42 = vld [vmem:[%s1772_s5 + $0x60] sm:$0xff]  }
 0x659   : > { %v919_v0 = vadd.f32 %v917_v63, %v907_v62 }
 0x65b   : > { %924 = vrot.lane.b32.xlu1 %v919_v0, %s1500_s18 }
 0x6c9   : > { %v923_v2 = vpop.permute.xlu0 %922 }
 0x6ca   : > { %v928_v3 = vsel %vm815_vm3, %v923_v2, 0.0 }
 0x6cb   : > { %929 = vadd.xlane.f32.xlu0 %v928_v3 }
 0x6cd   : > { %v925_v4 = vpop.permute.xlu1 %924 }
 0x6ce   : > { %v931_v5 = vsel %vm815_vm3, %v925_v4, 0.0 }
 0x6cf   : > { %932 = vadd.xlane.f32.xlu1 %v931_v5 }
 0x754   : > { %v930_v6 = vpop.xlane.xlu0 %929 }
 0x755   : > { %v935_v7 = vmul.f32 0.0625, %v930_v6 }
 0x757   : > { %v937_v8 = vsub.f32 %v918_v59, %v935_v7 }
 0x758   : > { %v933_v9 = vpop.xlane.xlu1 %932 }
 0x759   : > { %v936_v10 = vmul.f32 0.0625, %v933_v9  ;;  %v939_v11 = vmul.f32 %v937_v8, %v937_v8 }
 0x75b   : > { %v938_v12 = vsub.f32 %v919_v0, %v936_v10  ;;  %943 = vrot.lane.b32.xlu0 %v939_v11, %s1500_s18 }
 0x75d   : > { %v940_v13 = vmul.f32 %v938_v12, %v938_v12 }
 0x75f   : > { %945 = vrot.lane.b32.xlu1 %v940_v13, %s1500_s18 }
 0x7cd   : > { %v944_v14 = vpop.permute.xlu0 %943 }
 0x7ce   : > { %v949_v15 = vsel %vm815_vm3, %v944_v14, 0.0 }
 0x7cf   : > { %950 = vadd.xlane.f32.xlu0 %v949_v15 }
 0x7d1   : > { %v946_v16 = vpop.permute.xlu1 %945 }
 0x7d2   : > { %v952_v17 = vsel %vm815_vm3, %v946_v16, 0.0 }
 0x7d3   : > { %953 = vadd.xlane.f32.xlu1 %v952_v17 }
 0x7e4   : > { %980 = vrot.lane.b32.xlu1 %v1286_v18, %s1501_s19 }
 0x7e5   : > { %969 = vrot.lane.b32.xlu0 %v1285_v19, %s1501_s19 }
 0x858   : > { %v951_v21 = vpop.xlane.xlu0 %950 }
 0x859   : > { %v955_v22 = vmul.f32 0.0625, %v951_v21 }
 0x85b   : > { %v957_v23 = vadd.f32 1e-05, %v955_v22 }
 0x85c   : > { %v954_v24 = vpop.xlane.xlu1 %953  ;;  %v970_v29 = vpop.permute.xlu0 %969 }
 0x85d   : > { %1484 = vrsqrt.f32 %v957_v23  ;;  %v956_v25 = vmul.f32 0.0625, %v954_v24 }
 0x85f   : > { %v958_v26 = vadd.f32 1e-05, %v956_v25 }
 0x860   : > { %v981_v33 = vpop.permute.xlu1 %980 }
 0x861   : > { %1486 = vrsqrt.f32 %v958_v26 }
 0x86a   : > { %v1485_v27 = vpop.eup %1484 }
 0x86b   : > { %v961_v28 = vmul.f32 %v1485_v27, %v937_v8 }
 0x86d   : > { %v972_v32 = vmul.f32 %v970_v29, %v961_v28 }
 0x86e   : > { %v1487_v30 = vpop.eup %1486 }
 0x86f   : > { %v962_v31 = vmul.f32 %v1487_v30, %v938_v12  ;;  %v983_v35 = vadd.f32 %v981_v33, %v972_v32 }
 0x871   : > { %v973_v34 = vmul.f32 %v970_v29, %v962_v31 }
 0x873   : > { %v984_v36 = vadd.f32 %v981_v33, %v973_v34 }
 0x875   : > { %v985_v37 = vpack.c.bf16 %v984_v36, %v983_v35 }
 0x877   : > { %994 = vrot.lane.b32.xlu0 %v985_v37, %s1500_s18 }
 0x8e9   : > { %v995_v39 = vpop.permute.xlu0 %994 }
 0x8ea   : > { %1407 = vmatmul.mubr.msk.bf16.vlgmr.msra.gmra.mxu1 %vm815_vm3, %v995_v39 }
 0x8eb   : > { %1411 = vmatpush3.bf16.msra.mxu1 %v1460_v38  ;;  %1418 = vmatprep.mubr.msk.bf16.mxu1 %vm1497_vm0, %v1496_v1 }
 0x8ec   : > { %1412 = vmatprep.subr.bf16.mxu1 %v1496_v1 }
 0x8ef   : > { %1413 = vmatpush3.bf16.msra.mxu1 %v1461_v40 }
 0x8f0   : > { %1414 = vmatprep.subr.bf16.mxu1 %v1496_v1 }
 0x8f3   : > { %1415 = vmatpush3.bf16.msra.mxu1 %v1462_v41 }
 0x8f4   : > { %1416 = vmatprep.subr.bf16.mxu1 %v1496_v1  ;;  %v1290_v1 = vld [vmem:[%s1773_s6 + $0x8] ss:$0 sm:$0xff] }
 0x8f7   : > { %1417 = vmatpush3.bf16.msra.mxu1 %v1463_v42 }
 0x9aa   : > { %v1039_v44 = vpop.f32.mrf.mxu1 }
 0x9ab   : > { %v1040_v46 = vadd.f32 %v1287_v43, %v1039_v44 }
 0x9ac   : > { %v1408_v45 = vpop.f32.mrf.mxu1 }
 0x9ad   : > { %v1046_v50 = vmax.f32 %v1040_v46, 0.0 }
 0x9ae   : > { %v1042_v47 = vpop.f32.mrf.mxu1 }
 0x9af   : > { %v1043_v48 = vadd.f32 %v1287_v43, %v1042_v47 }
 0x9b0   : > { %v1409_v49 = vpop.f32.mrf.mxu1 }
 0x9b1   : > { %v1047_v51 = vmax.f32 %v1043_v48, 0.0 }
 0x9b3   : > { %v1048_v52 = vpack.c.bf16 %v1047_v51, %v1046_v50 }
 0x9b5   : > { %1419 = vmatmul.mubr.msk.bf16.vlgmr.msra.gmra.mxu1 %vm457_vm2, %v1048_v52 }
 0xa75   : > { %v1123_v53 = vpop.f32.mrf.mxu1 }
 0xa76   : > { %v1124_v54 = vadd.f32 %v1290_v1, %v1123_v53 }
 0xa77   : > { %v1420_v57 = vpop.f32.mrf.mxu1 }
 0xa78   : > { %v1130_v58 = vadd.f32 %v1124_v54, %v1656_v55 }
 0xa79   : > { %v1126_v59 = vpop.f32.mrf.mxu1 }
 0xa7a   : > { %1132 = vst.msk [vmem:[%s337_s20] sm:$0xff] %vm815_vm3, %v1130_v58  ;;  %v1127_v60 = vadd.f32 %v1290_v1, %v1126_v59 }
 0xa7b   : > { %v1421_v61 = vpop.f32.mrf.mxu1 }
 0xa7c   : > { %v1131_v62 = vadd.f32 %v1127_v60, %v1658_v56 }
 0xa7e   : > { %1133 = vst.msk [vmem:[%s337_s20 + $0x8] sm:$0xff] %vm815_vm3, %v1131_v62 }
 0xa7f PF: > { %s19_s27 = sadd.s32 1, %s1494_s27  }
 0xa80   : > { %p16_p4 = scmp.ge.s32.totalorder %s19_s27, 4  }
 0xa82   :  { %18 = sbr.rel (!%p16_p4) target bundleno = 1 (0x1), region = 93 }

</bundles_post_ra>
